<compile_context>
chip_gen: v5e
topology: v5e:2x2
jax: 0.10.0
libtpu: 0.0.40
codegen_flags: <defaults>
</compile_context>

<pallas_src>
import functools

import jax
import jax.numpy as jnp
from jax import lax
from jax.experimental import pallas as pl
from jax.experimental.pallas import tpu as pltpu

LN_EPS = 1e-5  # torch.nn.LayerNorm default


def _layernorm(x, gamma, beta):
    mu = jnp.mean(x, axis=-1, keepdims=True)
    var = jnp.mean((x - mu) ** 2, axis=-1, keepdims=True)
    return (x - mu) * lax.rsqrt(var + LN_EPS) * gamma + beta


def _gelu_exact(x):
    # torch.nn.GELU() default = exact erf formulation.
    return 0.5 * x * (1.0 + lax.erf(x * 0.7071067811865475))


# ------------------------------ fused kernel --------------------------------


def _transformer_kernel(x_ref,
                        ln1_g_ref, ln1_b_ref, wqkv_ref, wo_ref, bo_ref,
                        ln2_g_ref, ln2_b_ref, w1_ref, b1_ref, w2_ref, b2_ref,
                        ng_ref, nb_ref,
                        o_ref, *, depth, heads, dim_head, scale):
    """Full transformer forward for one batch element, all layers fused."""
    x = x_ref[0]                                           # (N, D), stays on-chip
    hdh = heads * dim_head

    for l in range(depth):                                 # static unroll over layers
        # ---------------- PreNorm(Attention) + residual ----------------
        xn = _layernorm(x, ln1_g_ref[l], ln1_b_ref[l])
        # Single fused QKV projection: (N, D) @ (D, 3*H*Dh).
        qkv = jnp.dot(xn, wqkv_ref[l], preferred_element_type=jnp.float32)
        ctx = []
        for h in range(heads):                             # static unroll over heads
            q = qkv[:, h * dim_head:(h + 1) * dim_head]                    # (N, Dh)
            k = qkv[:, hdh + h * dim_head: hdh + (h + 1) * dim_head]       # (N, Dh)
            v = qkv[:, 2 * hdh + h * dim_head: 2 * hdh + (h + 1) * dim_head]
            dots = jnp.dot(q, k.T, preferred_element_type=jnp.float32) * scale
            dots = dots - jnp.max(dots, axis=-1, keepdims=True)
            p = jnp.exp(dots)
            inv = pl.reciprocal(jnp.sum(p, axis=-1, keepdims=True), approx=True)
            attn = p * inv                                                 # softmax
            ctx.append(jnp.dot(attn, v, preferred_element_type=jnp.float32))
        ctx = jnp.concatenate(ctx, axis=-1)                # (N, H*Dh)
        # Single fused output projection: (N, H*Dh) @ (H*Dh, D) + bias.
        x = x + jnp.dot(ctx, wo_ref[l], preferred_element_type=jnp.float32) + bo_ref[l]

        # ---------------- PreNorm(FeedForward) + residual ----------------
        xn = _layernorm(x, ln2_g_ref[l], ln2_b_ref[l])
        h1 = jnp.dot(xn, w1_ref[l], preferred_element_type=jnp.float32) + b1_ref[l]
        h1 = _gelu_exact(h1)
        x = x + jnp.dot(h1, w2_ref[l], preferred_element_type=jnp.float32) + b2_ref[l]

    # ---------------- final LayerNorm ----------------
    o_ref[0] = _layernorm(x, ng_ref[...], nb_ref[...])


# ----------------------------- pallas wrapper --------------------------------


def _full_spec(shape):
    nd = len(shape)
    return pl.BlockSpec(shape, lambda b, nd=nd: (0,) * nd)


def transformer_forward(x, pp):
    """x: (B, N, D) float32; pp: packed params (see pack_params)."""
    B, N, D = x.shape
    kernel = functools.partial(
        _transformer_kernel,
        depth=pp["depth"], heads=pp["heads"],
        dim_head=pp["dim_head"], scale=pp["scale"])
    tensors = [pp["ln1_g"], pp["ln1_b"], pp["wqkv"], pp["wo"], pp["bo"],
               pp["ln2_g"], pp["ln2_b"], pp["w1"], pp["b1"], pp["w2"], pp["b2"],
               pp["norm_g"], pp["norm_b"]]
    return pl.pallas_call(
        kernel,
        out_shape=jax.ShapeDtypeStruct((B, N, D), x.dtype),
        grid=(B,),
        in_specs=[pl.BlockSpec((1, N, D), lambda b: (b, 0, 0))]
                 + [_full_spec(t.shape) for t in tensors],
        out_specs=pl.BlockSpec((1, N, D), lambda b: (b, 0, 0)),
        compiler_params=pltpu.CompilerParams(dimension_semantics=("parallel",)),
    )(x, *tensors)


# ------------------------ parameters, packing, reference ---------------------


def init_params(key, dim, depth, heads, dim_head, mlp_dim):
    layers = []
    for _ in range(depth):
        key, *ks = jax.random.split(key, 10)
        attn = dict(
            ln_g=jnp.ones((1, dim), jnp.float32),
            ln_b=jnp.zeros((1, dim), jnp.float32),
            wq=0.05 * jax.random.normal(ks[0], (heads, dim, dim_head), jnp.float32),
            wk=0.05 * jax.random.normal(ks[1], (heads, dim, dim_head), jnp.float32),
            wv=0.05 * jax.random.normal(ks[2], (heads, dim, dim_head), jnp.float32),
            wo=0.05 * jax.random.normal(ks[3], (heads, dim_head, dim), jnp.float32),
            bo=0.01 * jax.random.normal(ks[4], (1, dim), jnp.float32),
        )
        ff = dict(
            ln_g=jnp.ones((1, dim), jnp.float32),
            ln_b=jnp.zeros((1, dim), jnp.float32),
            w1=0.05 * jax.random.normal(ks[5], (dim, mlp_dim), jnp.float32),
            b1=0.01 * jax.random.normal(ks[6], (1, mlp_dim), jnp.float32),
            w2=0.05 * jax.random.normal(ks[7], (mlp_dim, dim), jnp.float32),
            b2=0.01 * jax.random.normal(ks[8], (1, dim), jnp.float32),
        )
        layers.append(dict(attn=attn, ff=ff))
    return dict(
        layers=layers,
        norm_g=jnp.ones((1, dim), jnp.float32),
        norm_b=jnp.zeros((1, dim), jnp.float32),
        heads=heads,
        dim_head=dim_head,
        scale=dim_head ** -0.5,
    )


def pack_params(params):
    """Fuse per-head weights and stack per-layer weights (done once, wrapper-side)."""
    def flat_heads(w):                      # (H, D, Dh) -> (D, H*Dh)
        H, D, Dh = w.shape
        return jnp.transpose(w, (1, 0, 2)).reshape(D, H * Dh)

    def stack(fn):
        return jnp.stack([fn(layer) for layer in params["layers"]])

    return dict(
        ln1_g=stack(lambda L: L["attn"]["ln_g"]),                    # (depth, 1, D)
        ln1_b=stack(lambda L: L["attn"]["ln_b"]),
        wqkv=stack(lambda L: jnp.concatenate(
            [flat_heads(L["attn"]["wq"]),
             flat_heads(L["attn"]["wk"]),
             flat_heads(L["attn"]["wv"])], axis=-1)),                # (depth, D, 3*H*Dh)
        wo=stack(lambda L: L["attn"]["wo"].reshape(
            -1, L["attn"]["wo"].shape[-1])),                         # (depth, H*Dh, D)
        bo=stack(lambda L: L["attn"]["bo"]),                         # (depth, 1, D)
        ln2_g=stack(lambda L: L["ff"]["ln_g"]),
        ln2_b=stack(lambda L: L["ff"]["ln_b"]),
        w1=stack(lambda L: L["ff"]["w1"]),                           # (depth, D, mlp)
        b1=stack(lambda L: L["ff"]["b1"]),                           # (depth, 1, mlp)
        w2=stack(lambda L: L["ff"]["w2"]),                           # (depth, mlp, D)
        b2=stack(lambda L: L["ff"]["b2"]),                           # (depth, 1, D)
        norm_g=params["norm_g"], norm_b=params["norm_b"],
        depth=len(params["layers"]),
        heads=params["heads"],
        dim_head=params["dim_head"],
        scale=params["scale"],
    )


def reference_forward(x, params):
    """Pure-JAX replica of the PyTorch Transformer.forward semantics."""
    scale = params["scale"]
    for layer in params["layers"]:
        a = layer["attn"]
        xn = _layernorm(x, a["ln_g"], a["ln_b"])
        q = jnp.einsum("bnd,hde->bhne", xn, a["wq"])
        k = jnp.einsum("bnd,hde->bhne", xn, a["wk"])
        v = jnp.einsum("bnd,hde->bhne", xn, a["wv"])
        dots = jnp.einsum("bhne,bhme->bhnm", q, k) * scale
        attn = jax.nn.softmax(dots, axis=-1)
        ctx = jnp.einsum("bhnm,bhme->bhne", attn, v)
        out = jnp.einsum("bhne,hed->bnd", ctx, a["wo"]) + a["bo"]
        x = x + out
        f = layer["ff"]
        xn = _layernorm(x, f["ln_g"], f["ln_b"])
        h = _gelu_exact(jnp.dot(xn, f["w1"]) + f["b1"])
        x = x + (jnp.dot(h, f["w2"]) + f["b2"])
    return _layernorm(x, params["norm_g"], params["norm_b"])


# --------------------------------- main --------------------------------------


if __name__ == "__main__":
    B, N = 2, 8
    dim, depth, heads, dim_head, mlp_dim = 32, 2, 4, 8, 64

    key = jax.random.PRNGKey(0)
    kx, kp = jax.random.split(key)
    x = jax.random.normal(kx, (B, N, dim), jnp.float32)
    params = init_params(kp, dim, depth, heads, dim_head, mlp_dim)
    packed = pack_params(params)

    out = transformer_forward(x, packed)
    out = jax.block_until_ready(out)

    ref = reference_forward(x, params)
    assert out.shape == (B, N, dim)
    # Tolerance relaxed slightly vs exact-f32 because the softmax denominator uses
    # the EUP approximate reciprocal (pl.reciprocal(approx=True)); observed error is
    # far below this bound.
    if not jnp.allclose(out, ref, atol=2e-3, rtol=2e-3):
        raise AssertionError(
            f"Pallas output mismatch, max abs err = {jnp.max(jnp.abs(out - ref))}")
    print("KERNEL_OK")
</pallas_src>

<mosaic_0001>
module attributes {stable_mosaic.version = 11 : i64} {
  func.func @_transformer_kernel(%arg0: i32, %arg1: memref<1x8x32xf32, #tpu.memory_space<vmem>>, %arg2: memref<2x1x32xf32, #tpu.memory_space<vmem>>, %arg3: memref<2x1x32xf32, #tpu.memory_space<vmem>>, %arg4: memref<2x32x96xf32, #tpu.memory_space<vmem>>, %arg5: memref<2x32x32xf32, #tpu.memory_space<vmem>>, %arg6: memref<2x1x32xf32, #tpu.memory_space<vmem>>, %arg7: memref<2x1x32xf32, #tpu.memory_space<vmem>>, %arg8: memref<2x1x32xf32, #tpu.memory_space<vmem>>, %arg9: memref<2x32x64xf32, #tpu.memory_space<vmem>>, %arg10: memref<2x1x64xf32, #tpu.memory_space<vmem>>, %arg11: memref<2x64x32xf32, #tpu.memory_space<vmem>>, %arg12: memref<2x1x32xf32, #tpu.memory_space<vmem>>, %arg13: memref<1x32xf32, #tpu.memory_space<vmem>>, %arg14: memref<1x32xf32, #tpu.memory_space<vmem>>, %arg15: memref<1x8x32xf32, #tpu.memory_space<vmem>>) attributes {dimension_semantics = [#tpu.dimension_semantics<parallel>], iteration_bounds = array<i64: 2>, scalar_prefetch = 0 : i64, scratch_operands = 0 : i64, tpu.core_type = #tpu.core_type<tc>, window_params = [{transform_indices = @transform_0, window_bounds = array<i64: 1, 8, 32>}, {pipeline_mode = #tpu.pipeline_mode<synchronous>, transform_indices = @transform_1, window_bounds = array<i64: 2, 1, 32>}, {pipeline_mode = #tpu.pipeline_mode<synchronous>, transform_indices = @transform_2, window_bounds = array<i64: 2, 1, 32>}, {pipeline_mode = #tpu.pipeline_mode<synchronous>, transform_indices = @transform_3, window_bounds = array<i64: 2, 32, 96>}, {pipeline_mode = #tpu.pipeline_mode<synchronous>, transform_indices = @transform_4, window_bounds = array<i64: 2, 32, 32>}, {pipeline_mode = #tpu.pipeline_mode<synchronous>, transform_indices = @transform_5, window_bounds = array<i64: 2, 1, 32>}, {pipeline_mode = #tpu.pipeline_mode<synchronous>, transform_indices = @transform_6, window_bounds = array<i64: 2, 1, 32>}, {pipeline_mode = #tpu.pipeline_mode<synchronous>, transform_indices = @transform_7, window_bounds = array<i64: 2, 1, 32>}, {pipeline_mode = #tpu.pipeline_mode<synchronous>, transform_indices = @transform_8, window_bounds = array<i64: 2, 32, 64>}, {pipeline_mode = #tpu.pipeline_mode<synchronous>, transform_indices = @transform_9, window_bounds = array<i64: 2, 1, 64>}, {pipeline_mode = #tpu.pipeline_mode<synchronous>, transform_indices = @transform_10, window_bounds = array<i64: 2, 64, 32>}, {pipeline_mode = #tpu.pipeline_mode<synchronous>, transform_indices = @transform_11, window_bounds = array<i64: 2, 1, 32>}, {pipeline_mode = #tpu.pipeline_mode<synchronous>, transform_indices = @transform_12, window_bounds = array<i64: 1, 32>}, {pipeline_mode = #tpu.pipeline_mode<synchronous>, transform_indices = @transform_13, window_bounds = array<i64: 1, 32>}, {transform_indices = @transform_14, window_bounds = array<i64: 1, 8, 32>}]} {
    %c0 = arith.constant 0 : index
    %c0_0 = arith.constant 0 : index
    %c0_1 = arith.constant 0 : index
    %0 = vector.load %arg1[%c0, %c0_0, %c0_1] : memref<1x8x32xf32, #tpu.memory_space<vmem>>, vector<1x8x32xf32>
    %1 = vector.shape_cast %0 : vector<1x8x32xf32> to vector<8x32xf32>
    %c0_2 = arith.constant 0 : index
    %c0_3 = arith.constant 0 : index
    %c0_4 = arith.constant 0 : index
    %2 = vector.load %arg2[%c0_2, %c0_3, %c0_4] : memref<2x1x32xf32, #tpu.memory_space<vmem>>, vector<1x1x32xf32>
    %3 = vector.shape_cast %2 : vector<1x1x32xf32> to vector<1x32xf32>
    %c0_5 = arith.constant 0 : index
    %c0_6 = arith.constant 0 : index
    %c0_7 = arith.constant 0 : index
    %4 = vector.load %arg3[%c0_5, %c0_6, %c0_7] : memref<2x1x32xf32, #tpu.memory_space<vmem>>, vector<1x1x32xf32>
    %5 = vector.shape_cast %4 : vector<1x1x32xf32> to vector<1x32xf32>
    %cst = arith.constant dense<0.000000e+00> : vector<8xf32>
    %6 = vector.multi_reduction <add>, %1, %cst [1] : vector<8x32xf32> to vector<8xf32>
    %7 = vector.shape_cast %6 : vector<8xf32> to vector<8x1xf32>
    %cst_8 = arith.constant 3.200000e+01 : f32
    %8 = vector.broadcast %cst_8 : f32 to vector<8x1xf32>
    %9 = arith.divf %7, %8 : vector<8x1xf32>
    %10 = vector.broadcast %9 : vector<8x1xf32> to vector<8x32xf32>
    %11 = arith.subf %1, %10 : vector<8x32xf32>
    %12 = arith.mulf %11, %11 : vector<8x32xf32>
    %cst_9 = arith.constant dense<0.000000e+00> : vector<8xf32>
    %13 = vector.multi_reduction <add>, %12, %cst_9 [1] : vector<8x32xf32> to vector<8xf32>
    %14 = vector.shape_cast %13 : vector<8xf32> to vector<8x1xf32>
    %cst_10 = arith.constant 3.200000e+01 : f32
    %15 = vector.broadcast %cst_10 : f32 to vector<8x1xf32>
    %16 = arith.divf %14, %15 : vector<8x1xf32>
    %17 = vector.broadcast %9 : vector<8x1xf32> to vector<8x32xf32>
    %18 = arith.subf %1, %17 : vector<8x32xf32>
    %cst_11 = arith.constant 9.99999974E-6 : f32
    %19 = vector.broadcast %cst_11 : f32 to vector<8x1xf32>
    %20 = arith.addf %16, %19 : vector<8x1xf32>
    %21 = math.rsqrt %20 : vector<8x1xf32>
    %22 = vector.broadcast %21 : vector<8x1xf32> to vector<8x32xf32>
    %23 = arith.mulf %18, %22 : vector<8x32xf32>
    %24 = vector.broadcast %3 : vector<1x32xf32> to vector<8x32xf32>
    %25 = arith.mulf %23, %24 : vector<8x32xf32>
    %26 = vector.broadcast %5 : vector<1x32xf32> to vector<8x32xf32>
    %27 = arith.addf %25, %26 : vector<8x32xf32>
    %c0_12 = arith.constant 0 : index
    %c0_13 = arith.constant 0 : index
    %c0_14 = arith.constant 0 : index
    %28 = vector.load %arg4[%c0_12, %c0_13, %c0_14] : memref<2x32x96xf32, #tpu.memory_space<vmem>>, vector<1x32x96xf32>
    %29 = vector.shape_cast %28 : vector<1x32x96xf32> to vector<32x96xf32>
    %cst_15 = arith.constant dense<0.000000e+00> : vector<8x96xf32>
    %30 = tpu.matmul %27, %29, %cst_15 {dimension_numbers = #tpu.dot_dimension_numbers<[1], [0], [0], [1], [0, 0, 1, 1], [], []>} : vector<8x32xf32>, vector<32x96xf32>, vector<8x96xf32> -> vector<8x96xf32>
    %31 = vector.extract_strided_slice %30 {offsets = [0, 0], sizes = [8, 8], strides = [1, 1]} : vector<8x96xf32> to vector<8x8xf32>
    %32 = vector.extract_strided_slice %30 {offsets = [0, 32], sizes = [8, 8], strides = [1, 1]} : vector<8x96xf32> to vector<8x8xf32>
    %33 = vector.extract_strided_slice %30 {offsets = [0, 64], sizes = [8, 8], strides = [1, 1]} : vector<8x96xf32> to vector<8x8xf32>
    %34 = tpu.transpose %32, [1, 0] : vector<8x8xf32> -> vector<8x8xf32>
    %cst_16 = arith.constant dense<0.000000e+00> : vector<8x8xf32>
    %35 = tpu.matmul %31, %34, %cst_16 {dimension_numbers = #tpu.dot_dimension_numbers<[1], [0], [0], [1], [0, 0, 1, 1], [], []>} : vector<8x8xf32>, vector<8x8xf32>, vector<8x8xf32> -> vector<8x8xf32>
    %cst_17 = arith.constant 0.353553385 : f32
    %36 = vector.broadcast %cst_17 : f32 to vector<8x8xf32>
    %37 = arith.mulf %35, %36 : vector<8x8xf32>
    %cst_18 = arith.constant dense<0xFF800000> : vector<8xf32>
    %38 = vector.multi_reduction <maximumf>, %37, %cst_18 [1] : vector<8x8xf32> to vector<8xf32>
    %39 = vector.shape_cast %38 : vector<8xf32> to vector<8x1xf32>
    %40 = vector.broadcast %39 : vector<8x1xf32> to vector<8x8xf32>
    %41 = arith.subf %37, %40 : vector<8x8xf32>
    %42 = math.exp %41 : vector<8x8xf32>
    %cst_19 = arith.constant dense<0.000000e+00> : vector<8xf32>
    %43 = vector.multi_reduction <add>, %42, %cst_19 [1] : vector<8x8xf32> to vector<8xf32>
    %44 = vector.shape_cast %43 : vector<8xf32> to vector<8x1xf32>
    %45 = tpu.reciprocal %44 {approx = true} : vector<8x1xf32> -> vector<8x1xf32>
    %46 = vector.broadcast %45 : vector<8x1xf32> to vector<8x8xf32>
    %47 = arith.mulf %42, %46 : vector<8x8xf32>
    %cst_20 = arith.constant dense<0.000000e+00> : vector<8x8xf32>
    %48 = tpu.matmul %47, %33, %cst_20 {dimension_numbers = #tpu.dot_dimension_numbers<[1], [0], [0], [1], [0, 0, 1, 1], [], []>} : vector<8x8xf32>, vector<8x8xf32>, vector<8x8xf32> -> vector<8x8xf32>
    %49 = vector.extract_strided_slice %30 {offsets = [0, 8], sizes = [8, 8], strides = [1, 1]} : vector<8x96xf32> to vector<8x8xf32>
    %50 = vector.extract_strided_slice %30 {offsets = [0, 40], sizes = [8, 8], strides = [1, 1]} : vector<8x96xf32> to vector<8x8xf32>
    %51 = vector.extract_strided_slice %30 {offsets = [0, 72], sizes = [8, 8], strides = [1, 1]} : vector<8x96xf32> to vector<8x8xf32>
    %52 = tpu.transpose %50, [1, 0] : vector<8x8xf32> -> vector<8x8xf32>
    %cst_21 = arith.constant dense<0.000000e+00> : vector<8x8xf32>
    %53 = tpu.matmul %49, %52, %cst_21 {dimension_numbers = #tpu.dot_dimension_numbers<[1], [0], [0], [1], [0, 0, 1, 1], [], []>} : vector<8x8xf32>, vector<8x8xf32>, vector<8x8xf32> -> vector<8x8xf32>
    %cst_22 = arith.constant 0.353553385 : f32
    %54 = vector.broadcast %cst_22 : f32 to vector<8x8xf32>
    %55 = arith.mulf %53, %54 : vector<8x8xf32>
    %cst_23 = arith.constant dense<0xFF800000> : vector<8xf32>
    %56 = vector.multi_reduction <maximumf>, %55, %cst_23 [1] : vector<8x8xf32> to vector<8xf32>
    %57 = vector.shape_cast %56 : vector<8xf32> to vector<8x1xf32>
    %58 = vector.broadcast %57 : vector<8x1xf32> to vector<8x8xf32>
    %59 = arith.subf %55, %58 : vector<8x8xf32>
    %60 = math.exp %59 : vector<8x8xf32>
    %cst_24 = arith.constant dense<0.000000e+00> : vector<8xf32>
    %61 = vector.multi_reduction <add>, %60, %cst_24 [1] : vector<8x8xf32> to vector<8xf32>
    %62 = vector.shape_cast %61 : vector<8xf32> to vector<8x1xf32>
    %63 = tpu.reciprocal %62 {approx = true} : vector<8x1xf32> -> vector<8x1xf32>
    %64 = vector.broadcast %63 : vector<8x1xf32> to vector<8x8xf32>
    %65 = arith.mulf %60, %64 : vector<8x8xf32>
    %cst_25 = arith.constant dense<0.000000e+00> : vector<8x8xf32>
    %66 = tpu.matmul %65, %51, %cst_25 {dimension_numbers = #tpu.dot_dimension_numbers<[1], [0], [0], [1], [0, 0, 1, 1], [], []>} : vector<8x8xf32>, vector<8x8xf32>, vector<8x8xf32> -> vector<8x8xf32>
    %67 = vector.extract_strided_slice %30 {offsets = [0, 16], sizes = [8, 8], strides = [1, 1]} : vector<8x96xf32> to vector<8x8xf32>
    %68 = vector.extract_strided_slice %30 {offsets = [0, 48], sizes = [8, 8], strides = [1, 1]} : vector<8x96xf32> to vector<8x8xf32>
    %69 = vector.extract_strided_slice %30 {offsets = [0, 80], sizes = [8, 8], strides = [1, 1]} : vector<8x96xf32> to vector<8x8xf32>
    %70 = tpu.transpose %68, [1, 0] : vector<8x8xf32> -> vector<8x8xf32>
    %cst_26 = arith.constant dense<0.000000e+00> : vector<8x8xf32>
    %71 = tpu.matmul %67, %70, %cst_26 {dimension_numbers = #tpu.dot_dimension_numbers<[1], [0], [0], [1], [0, 0, 1, 1], [], []>} : vector<8x8xf32>, vector<8x8xf32>, vector<8x8xf32> -> vector<8x8xf32>
    %cst_27 = arith.constant 0.353553385 : f32
    %72 = vector.broadcast %cst_27 : f32 to vector<8x8xf32>
    %73 = arith.mulf %71, %72 : vector<8x8xf32>
    %cst_28 = arith.constant dense<0xFF800000> : vector<8xf32>
    %74 = vector.multi_reduction <maximumf>, %73, %cst_28 [1] : vector<8x8xf32> to vector<8xf32>
    %75 = vector.shape_cast %74 : vector<8xf32> to vector<8x1xf32>
    %76 = vector.broadcast %75 : vector<8x1xf32> to vector<8x8xf32>
    %77 = arith.subf %73, %76 : vector<8x8xf32>
    %78 = math.exp %77 : vector<8x8xf32>
    %cst_29 = arith.constant dense<0.000000e+00> : vector<8xf32>
    %79 = vector.multi_reduction <add>, %78, %cst_29 [1] : vector<8x8xf32> to vector<8xf32>
    %80 = vector.shape_cast %79 : vector<8xf32> to vector<8x1xf32>
    %81 = tpu.reciprocal %80 {approx = true} : vector<8x1xf32> -> vector<8x1xf32>
    %82 = vector.broadcast %81 : vector<8x1xf32> to vector<8x8xf32>
    %83 = arith.mulf %78, %82 : vector<8x8xf32>
    %cst_30 = arith.constant dense<0.000000e+00> : vector<8x8xf32>
    %84 = tpu.matmul %83, %69, %cst_30 {dimension_numbers = #tpu.dot_dimension_numbers<[1], [0], [0], [1], [0, 0, 1, 1], [], []>} : vector<8x8xf32>, vector<8x8xf32>, vector<8x8xf32> -> vector<8x8xf32>
    %85 = vector.extract_strided_slice %30 {offsets = [0, 24], sizes = [8, 8], strides = [1, 1]} : vector<8x96xf32> to vector<8x8xf32>
    %86 = vector.extract_strided_slice %30 {offsets = [0, 56], sizes = [8, 8], strides = [1, 1]} : vector<8x96xf32> to vector<8x8xf32>
    %87 = vector.extract_strided_slice %30 {offsets = [0, 88], sizes = [8, 8], strides = [1, 1]} : vector<8x96xf32> to vector<8x8xf32>
    %88 = tpu.transpose %86, [1, 0] : vector<8x8xf32> -> vector<8x8xf32>
    %cst_31 = arith.constant dense<0.000000e+00> : vector<8x8xf32>
    %89 = tpu.matmul %85, %88, %cst_31 {dimension_numbers = #tpu.dot_dimension_numbers<[1], [0], [0], [1], [0, 0, 1, 1], [], []>} : vector<8x8xf32>, vector<8x8xf32>, vector<8x8xf32> -> vector<8x8xf32>
    %cst_32 = arith.constant 0.353553385 : f32
    %90 = vector.broadcast %cst_32 : f32 to vector<8x8xf32>
    %91 = arith.mulf %89, %90 : vector<8x8xf32>
    %cst_33 = arith.constant dense<0xFF800000> : vector<8xf32>
    %92 = vector.multi_reduction <maximumf>, %91, %cst_33 [1] : vector<8x8xf32> to vector<8xf32>
    %93 = vector.shape_cast %92 : vector<8xf32> to vector<8x1xf32>
    %94 = vector.broadcast %93 : vector<8x1xf32> to vector<8x8xf32>
    %95 = arith.subf %91, %94 : vector<8x8xf32>
    %96 = math.exp %95 : vector<8x8xf32>
    %cst_34 = arith.constant dense<0.000000e+00> : vector<8xf32>
    %97 = vector.multi_reduction <add>, %96, %cst_34 [1] : vector<8x8xf32> to vector<8xf32>
    %98 = vector.shape_cast %97 : vector<8xf32> to vector<8x1xf32>
    %99 = tpu.reciprocal %98 {approx = true} : vector<8x1xf32> -> vector<8x1xf32>
    %100 = vector.broadcast %99 : vector<8x1xf32> to vector<8x8xf32>
    %101 = arith.mulf %96, %100 : vector<8x8xf32>
    %cst_35 = arith.constant dense<0.000000e+00> : vector<8x8xf32>
    %102 = tpu.matmul %101, %87, %cst_35 {dimension_numbers = #tpu.dot_dimension_numbers<[1], [0], [0], [1], [0, 0, 1, 1], [], []>} : vector<8x8xf32>, vector<8x8xf32>, vector<8x8xf32> -> vector<8x8xf32>
    %103 = tpu.concatenate %48, %66, %84, %102 in 1 : vector<8x8xf32>, vector<8x8xf32>, vector<8x8xf32>, vector<8x8xf32> -> vector<8x32xf32>
    %c0_36 = arith.constant 0 : index
    %c0_37 = arith.constant 0 : index
    %c0_38 = arith.constant 0 : index
    %104 = vector.load %arg5[%c0_36, %c0_37, %c0_38] : memref<2x32x32xf32, #tpu.memory_space<vmem>>, vector<1x32x32xf32>
    %105 = vector.shape_cast %104 : vector<1x32x32xf32> to vector<32x32xf32>
    %cst_39 = arith.constant dense<0.000000e+00> : vector<8x32xf32>
    %106 = tpu.matmul %103, %105, %cst_39 {dimension_numbers = #tpu.dot_dimension_numbers<[1], [0], [0], [1], [0, 0, 1, 1], [], []>} : vector<8x32xf32>, vector<32x32xf32>, vector<8x32xf32> -> vector<8x32xf32>
    %107 = arith.addf %1, %106 : vector<8x32xf32>
    %c0_40 = arith.constant 0 : index
    %c0_41 = arith.constant 0 : index
    %c0_42 = arith.constant 0 : index
    %108 = vector.load %arg6[%c0_40, %c0_41, %c0_42] : memref<2x1x32xf32, #tpu.memory_space<vmem>>, vector<1x1x32xf32>
    %109 = vector.shape_cast %108 : vector<1x1x32xf32> to vector<1x32xf32>
    %110 = vector.broadcast %109 : vector<1x32xf32> to vector<8x32xf32>
    %111 = arith.addf %107, %110 : vector<8x32xf32>
    %c0_43 = arith.constant 0 : index
    %c0_44 = arith.constant 0 : index
    %c0_45 = arith.constant 0 : index
    %112 = vector.load %arg7[%c0_43, %c0_44, %c0_45] : memref<2x1x32xf32, #tpu.memory_space<vmem>>, vector<1x1x32xf32>
    %113 = vector.shape_cast %112 : vector<1x1x32xf32> to vector<1x32xf32>
    %c0_46 = arith.constant 0 : index
    %c0_47 = arith.constant 0 : index
    %c0_48 = arith.constant 0 : index
    %114 = vector.load %arg8[%c0_46, %c0_47, %c0_48] : memref<2x1x32xf32, #tpu.memory_space<vmem>>, vector<1x1x32xf32>
    %115 = vector.shape_cast %114 : vector<1x1x32xf32> to vector<1x32xf32>
    %cst_49 = arith.constant dense<0.000000e+00> : vector<8xf32>
    %116 = vector.multi_reduction <add>, %111, %cst_49 [1] : vector<8x32xf32> to vector<8xf32>
    %117 = vector.shape_cast %116 : vector<8xf32> to vector<8x1xf32>
    %cst_50 = arith.constant 3.200000e+01 : f32
    %118 = vector.broadcast %cst_50 : f32 to vector<8x1xf32>
    %119 = arith.divf %117, %118 : vector<8x1xf32>
    %120 = vector.broadcast %119 : vector<8x1xf32> to vector<8x32xf32>
    %121 = arith.subf %111, %120 : vector<8x32xf32>
    %122 = arith.mulf %121, %121 : vector<8x32xf32>
    %cst_51 = arith.constant dense<0.000000e+00> : vector<8xf32>
    %123 = vector.multi_reduction <add>, %122, %cst_51 [1] : vector<8x32xf32> to vector<8xf32>
    %124 = vector.shape_cast %123 : vector<8xf32> to vector<8x1xf32>
    %cst_52 = arith.constant 3.200000e+01 : f32
    %125 = vector.broadcast %cst_52 : f32 to vector<8x1xf32>
    %126 = arith.divf %124, %125 : vector<8x1xf32>
    %127 = vector.broadcast %119 : vector<8x1xf32> to vector<8x32xf32>
    %128 = arith.subf %111, %127 : vector<8x32xf32>
    %cst_53 = arith.constant 9.99999974E-6 : f32
    %129 = vector.broadcast %cst_53 : f32 to vector<8x1xf32>
    %130 = arith.addf %126, %129 : vector<8x1xf32>
    %131 = math.rsqrt %130 : vector<8x1xf32>
    %132 = vector.broadcast %131 : vector<8x1xf32> to vector<8x32xf32>
    %133 = arith.mulf %128, %132 : vector<8x32xf32>
    %134 = vector.broadcast %113 : vector<1x32xf32> to vector<8x32xf32>
    %135 = arith.mulf %133, %134 : vector<8x32xf32>
    %136 = vector.broadcast %115 : vector<1x32xf32> to vector<8x32xf32>
    %137 = arith.addf %135, %136 : vector<8x32xf32>
    %c0_54 = arith.constant 0 : index
    %c0_55 = arith.constant 0 : index
    %c0_56 = arith.constant 0 : index
    %138 = vector.load %arg9[%c0_54, %c0_55, %c0_56] : memref<2x32x64xf32, #tpu.memory_space<vmem>>, vector<1x32x64xf32>
    %139 = vector.shape_cast %138 : vector<1x32x64xf32> to vector<32x64xf32>
    %cst_57 = arith.constant dense<0.000000e+00> : vector<8x64xf32>
    %140 = tpu.matmul %137, %139, %cst_57 {dimension_numbers = #tpu.dot_dimension_numbers<[1], [0], [0], [1], [0, 0, 1, 1], [], []>} : vector<8x32xf32>, vector<32x64xf32>, vector<8x64xf32> -> vector<8x64xf32>
    %c0_58 = arith.constant 0 : index
    %c0_59 = arith.constant 0 : index
    %c0_60 = arith.constant 0 : index
    %141 = vector.load %arg10[%c0_58, %c0_59, %c0_60] : memref<2x1x64xf32, #tpu.memory_space<vmem>>, vector<1x1x64xf32>
    %142 = vector.shape_cast %141 : vector<1x1x64xf32> to vector<1x64xf32>
    %143 = vector.broadcast %142 : vector<1x64xf32> to vector<8x64xf32>
    %144 = arith.addf %140, %143 : vector<8x64xf32>
    %cst_61 = arith.constant 5.000000e-01 : f32
    %145 = vector.broadcast %cst_61 : f32 to vector<8x64xf32>
    %146 = arith.mulf %145, %144 : vector<8x64xf32>
    %cst_62 = arith.constant 0.707106769 : f32
    %147 = vector.broadcast %cst_62 : f32 to vector<8x64xf32>
    %148 = arith.mulf %144, %147 : vector<8x64xf32>
    %149 = math.erf %148 : vector<8x64xf32>
    %cst_63 = arith.constant 1.000000e+00 : f32
    %150 = vector.broadcast %cst_63 : f32 to vector<8x64xf32>
    %151 = arith.addf %150, %149 : vector<8x64xf32>
    %152 = arith.mulf %146, %151 : vector<8x64xf32>
    %c0_64 = arith.constant 0 : index
    %c0_65 = arith.constant 0 : index
    %c0_66 = arith.constant 0 : index
    %153 = vector.load %arg11[%c0_64, %c0_65, %c0_66] : memref<2x64x32xf32, #tpu.memory_space<vmem>>, vector<1x64x32xf32>
    %154 = vector.shape_cast %153 : vector<1x64x32xf32> to vector<64x32xf32>
    %cst_67 = arith.constant dense<0.000000e+00> : vector<8x32xf32>
    %155 = tpu.matmul %152, %154, %cst_67 {dimension_numbers = #tpu.dot_dimension_numbers<[1], [0], [0], [1], [0, 0, 1, 1], [], []>} : vector<8x64xf32>, vector<64x32xf32>, vector<8x32xf32> -> vector<8x32xf32>
    %156 = arith.addf %111, %155 : vector<8x32xf32>
    %c0_68 = arith.constant 0 : index
    %c0_69 = arith.constant 0 : index
    %c0_70 = arith.constant 0 : index
    %157 = vector.load %arg12[%c0_68, %c0_69, %c0_70] : memref<2x1x32xf32, #tpu.memory_space<vmem>>, vector<1x1x32xf32>
    %158 = vector.shape_cast %157 : vector<1x1x32xf32> to vector<1x32xf32>
    %159 = vector.broadcast %158 : vector<1x32xf32> to vector<8x32xf32>
    %160 = arith.addf %156, %159 : vector<8x32xf32>
    %c1 = arith.constant 1 : index
    %c0_71 = arith.constant 0 : index
    %c0_72 = arith.constant 0 : index
    %161 = vector.load %arg2[%c1, %c0_71, %c0_72] : memref<2x1x32xf32, #tpu.memory_space<vmem>>, vector<1x1x32xf32>
    %162 = vector.shape_cast %161 : vector<1x1x32xf32> to vector<1x32xf32>
    %c1_73 = arith.constant 1 : index
    %c0_74 = arith.constant 0 : index
    %c0_75 = arith.constant 0 : index
    %163 = vector.load %arg3[%c1_73, %c0_74, %c0_75] : memref<2x1x32xf32, #tpu.memory_space<vmem>>, vector<1x1x32xf32>
    %164 = vector.shape_cast %163 : vector<1x1x32xf32> to vector<1x32xf32>
    %cst_76 = arith.constant dense<0.000000e+00> : vector<8xf32>
    %165 = vector.multi_reduction <add>, %160, %cst_76 [1] : vector<8x32xf32> to vector<8xf32>
    %166 = vector.shape_cast %165 : vector<8xf32> to vector<8x1xf32>
    %cst_77 = arith.constant 3.200000e+01 : f32
    %167 = vector.broadcast %cst_77 : f32 to vector<8x1xf32>
    %168 = arith.divf %166, %167 : vector<8x1xf32>
    %169 = vector.broadcast %168 : vector<8x1xf32> to vector<8x32xf32>
    %170 = arith.subf %160, %169 : vector<8x32xf32>
    %171 = arith.mulf %170, %170 : vector<8x32xf32>
    %cst_78 = arith.constant dense<0.000000e+00> : vector<8xf32>
    %172 = vector.multi_reduction <add>, %171, %cst_78 [1] : vector<8x32xf32> to vector<8xf32>
    %173 = vector.shape_cast %172 : vector<8xf32> to vector<8x1xf32>
    %cst_79 = arith.constant 3.200000e+01 : f32
    %174 = vector.broadcast %cst_79 : f32 to vector<8x1xf32>
    %175 = arith.divf %173, %174 : vector<8x1xf32>
    %176 = vector.broadcast %168 : vector<8x1xf32> to vector<8x32xf32>
    %177 = arith.subf %160, %176 : vector<8x32xf32>
    %cst_80 = arith.constant 9.99999974E-6 : f32
    %178 = vector.broadcast %cst_80 : f32 to vector<8x1xf32>
    %179 = arith.addf %175, %178 : vector<8x1xf32>
    %180 = math.rsqrt %179 : vector<8x1xf32>
    %181 = vector.broadcast %180 : vector<8x1xf32> to vector<8x32xf32>
    %182 = arith.mulf %177, %181 : vector<8x32xf32>
    %183 = vector.broadcast %162 : vector<1x32xf32> to vector<8x32xf32>
    %184 = arith.mulf %182, %183 : vector<8x32xf32>
    %185 = vector.broadcast %164 : vector<1x32xf32> to vector<8x32xf32>
    %186 = arith.addf %184, %185 : vector<8x32xf32>
    %c1_81 = arith.constant 1 : index
    %c0_82 = arith.constant 0 : index
    %c0_83 = arith.constant 0 : index
    %187 = vector.load %arg4[%c1_81, %c0_82, %c0_83] : memref<2x32x96xf32, #tpu.memory_space<vmem>>, vector<1x32x96xf32>
    %188 = vector.shape_cast %187 : vector<1x32x96xf32> to vector<32x96xf32>
    %cst_84 = arith.constant dense<0.000000e+00> : vector<8x96xf32>
    %189 = tpu.matmul %186, %188, %cst_84 {dimension_numbers = #tpu.dot_dimension_numbers<[1], [0], [0], [1], [0, 0, 1, 1], [], []>} : vector<8x32xf32>, vector<32x96xf32>, vector<8x96xf32> -> vector<8x96xf32>
    %190 = vector.extract_strided_slice %189 {offsets = [0, 0], sizes = [8, 8], strides = [1, 1]} : vector<8x96xf32> to vector<8x8xf32>
    %191 = vector.extract_strided_slice %189 {offsets = [0, 32], sizes = [8, 8], strides = [1, 1]} : vector<8x96xf32> to vector<8x8xf32>
    %192 = vector.extract_strided_slice %189 {offsets = [0, 64], sizes = [8, 8], strides = [1, 1]} : vector<8x96xf32> to vector<8x8xf32>
    %193 = tpu.transpose %191, [1, 0] : vector<8x8xf32> -> vector<8x8xf32>
    %cst_85 = arith.constant dense<0.000000e+00> : vector<8x8xf32>
    %194 = tpu.matmul %190, %193, %cst_85 {dimension_numbers = #tpu.dot_dimension_numbers<[1], [0], [0], [1], [0, 0, 1, 1], [], []>} : vector<8x8xf32>, vector<8x8xf32>, vector<8x8xf32> -> vector<8x8xf32>
    %cst_86 = arith.constant 0.353553385 : f32
    %195 = vector.broadcast %cst_86 : f32 to vector<8x8xf32>
    %196 = arith.mulf %194, %195 : vector<8x8xf32>
    %cst_87 = arith.constant dense<0xFF800000> : vector<8xf32>
    %197 = vector.multi_reduction <maximumf>, %196, %cst_87 [1] : vector<8x8xf32> to vector<8xf32>
    %198 = vector.shape_cast %197 : vector<8xf32> to vector<8x1xf32>
    %199 = vector.broadcast %198 : vector<8x1xf32> to vector<8x8xf32>
    %200 = arith.subf %196, %199 : vector<8x8xf32>
    %201 = math.exp %200 : vector<8x8xf32>
    %cst_88 = arith.constant dense<0.000000e+00> : vector<8xf32>
    %202 = vector.multi_reduction <add>, %201, %cst_88 [1] : vector<8x8xf32> to vector<8xf32>
    %203 = vector.shape_cast %202 : vector<8xf32> to vector<8x1xf32>
    %204 = tpu.reciprocal %203 {approx = true} : vector<8x1xf32> -> vector<8x1xf32>
    %205 = vector.broadcast %204 : vector<8x1xf32> to vector<8x8xf32>
    %206 = arith.mulf %201, %205 : vector<8x8xf32>
    %cst_89 = arith.constant dense<0.000000e+00> : vector<8x8xf32>
    %207 = tpu.matmul %206, %192, %cst_89 {dimension_numbers = #tpu.dot_dimension_numbers<[1], [0], [0], [1], [0, 0, 1, 1], [], []>} : vector<8x8xf32>, vector<8x8xf32>, vector<8x8xf32> -> vector<8x8xf32>
    %208 = vector.extract_strided_slice %189 {offsets = [0, 8], sizes = [8, 8], strides = [1, 1]} : vector<8x96xf32> to vector<8x8xf32>
    %209 = vector.extract_strided_slice %189 {offsets = [0, 40], sizes = [8, 8], strides = [1, 1]} : vector<8x96xf32> to vector<8x8xf32>
    %210 = vector.extract_strided_slice %189 {offsets = [0, 72], sizes = [8, 8], strides = [1, 1]} : vector<8x96xf32> to vector<8x8xf32>
    %211 = tpu.transpose %209, [1, 0] : vector<8x8xf32> -> vector<8x8xf32>
    %cst_90 = arith.constant dense<0.000000e+00> : vector<8x8xf32>
    %212 = tpu.matmul %208, %211, %cst_90 {dimension_numbers = #tpu.dot_dimension_numbers<[1], [0], [0], [1], [0, 0, 1, 1], [], []>} : vector<8x8xf32>, vector<8x8xf32>, vector<8x8xf32> -> vector<8x8xf32>
    %cst_91 = arith.constant 0.353553385 : f32
    %213 = vector.broadcast %cst_91 : f32 to vector<8x8xf32>
    %214 = arith.mulf %212, %213 : vector<8x8xf32>
    %cst_92 = arith.constant dense<0xFF800000> : vector<8xf32>
    %215 = vector.multi_reduction <maximumf>, %214, %cst_92 [1] : vector<8x8xf32> to vector<8xf32>
    %216 = vector.shape_cast %215 : vector<8xf32> to vector<8x1xf32>
    %217 = vector.broadcast %216 : vector<8x1xf32> to vector<8x8xf32>
    %218 = arith.subf %214, %217 : vector<8x8xf32>
    %219 = math.exp %218 : vector<8x8xf32>
    %cst_93 = arith.constant dense<0.000000e+00> : vector<8xf32>
    %220 = vector.multi_reduction <add>, %219, %cst_93 [1] : vector<8x8xf32> to vector<8xf32>
    %221 = vector.shape_cast %220 : vector<8xf32> to vector<8x1xf32>
    %222 = tpu.reciprocal %221 {approx = true} : vector<8x1xf32> -> vector<8x1xf32>
    %223 = vector.broadcast %222 : vector<8x1xf32> to vector<8x8xf32>
    %224 = arith.mulf %219, %223 : vector<8x8xf32>
    %cst_94 = arith.constant dense<0.000000e+00> : vector<8x8xf32>
    %225 = tpu.matmul %224, %210, %cst_94 {dimension_numbers = #tpu.dot_dimension_numbers<[1], [0], [0], [1], [0, 0, 1, 1], [], []>} : vector<8x8xf32>, vector<8x8xf32>, vector<8x8xf32> -> vector<8x8xf32>
    %226 = vector.extract_strided_slice %189 {offsets = [0, 16], sizes = [8, 8], strides = [1, 1]} : vector<8x96xf32> to vector<8x8xf32>
    %227 = vector.extract_strided_slice %189 {offsets = [0, 48], sizes = [8, 8], strides = [1, 1]} : vector<8x96xf32> to vector<8x8xf32>
    %228 = vector.extract_strided_slice %189 {offsets = [0, 80], sizes = [8, 8], strides = [1, 1]} : vector<8x96xf32> to vector<8x8xf32>
    %229 = tpu.transpose %227, [1, 0] : vector<8x8xf32> -> vector<8x8xf32>
    %cst_95 = arith.constant dense<0.000000e+00> : vector<8x8xf32>
    %230 = tpu.matmul %226, %229, %cst_95 {dimension_numbers = #tpu.dot_dimension_numbers<[1], [0], [0], [1], [0, 0, 1, 1], [], []>} : vector<8x8xf32>, vector<8x8xf32>, vector<8x8xf32> -> vector<8x8xf32>
    %cst_96 = arith.constant 0.353553385 : f32
    %231 = vector.broadcast %cst_96 : f32 to vector<8x8xf32>
    %232 = arith.mulf %230, %231 : vector<8x8xf32>
    %cst_97 = arith.constant dense<0xFF800000> : vector<8xf32>
    %233 = vector.multi_reduction <maximumf>, %232, %cst_97 [1] : vector<8x8xf32> to vector<8xf32>
    %234 = vector.shape_cast %233 : vector<8xf32> to vector<8x1xf32>
    %235 = vector.broadcast %234 : vector<8x1xf32> to vector<8x8xf32>
    %236 = arith.subf %232, %235 : vector<8x8xf32>
    %237 = math.exp %236 : vector<8x8xf32>
    %cst_98 = arith.constant dense<0.000000e+00> : vector<8xf32>
    %238 = vector.multi_reduction <add>, %237, %cst_98 [1] : vector<8x8xf32> to vector<8xf32>
    %239 = vector.shape_cast %238 : vector<8xf32> to vector<8x1xf32>
    %240 = tpu.reciprocal %239 {approx = true} : vector<8x1xf32> -> vector<8x1xf32>
    %241 = vector.broadcast %240 : vector<8x1xf32> to vector<8x8xf32>
    %242 = arith.mulf %237, %241 : vector<8x8xf32>
    %cst_99 = arith.constant dense<0.000000e+00> : vector<8x8xf32>
    %243 = tpu.matmul %242, %228, %cst_99 {dimension_numbers = #tpu.dot_dimension_numbers<[1], [0], [0], [1], [0, 0, 1, 1], [], []>} : vector<8x8xf32>, vector<8x8xf32>, vector<8x8xf32> -> vector<8x8xf32>
    %244 = vector.extract_strided_slice %189 {offsets = [0, 24], sizes = [8, 8], strides = [1, 1]} : vector<8x96xf32> to vector<8x8xf32>
    %245 = vector.extract_strided_slice %189 {offsets = [0, 56], sizes = [8, 8], strides = [1, 1]} : vector<8x96xf32> to vector<8x8xf32>
    %246 = vector.extract_strided_slice %189 {offsets = [0, 88], sizes = [8, 8], strides = [1, 1]} : vector<8x96xf32> to vector<8x8xf32>
    %247 = tpu.transpose %245, [1, 0] : vector<8x8xf32> -> vector<8x8xf32>
    %cst_100 = arith.constant dense<0.000000e+00> : vector<8x8xf32>
    %248 = tpu.matmul %244, %247, %cst_100 {dimension_numbers = #tpu.dot_dimension_numbers<[1], [0], [0], [1], [0, 0, 1, 1], [], []>} : vector<8x8xf32>, vector<8x8xf32>, vector<8x8xf32> -> vector<8x8xf32>
    %cst_101 = arith.constant 0.353553385 : f32
    %249 = vector.broadcast %cst_101 : f32 to vector<8x8xf32>
    %250 = arith.mulf %248, %249 : vector<8x8xf32>
    %cst_102 = arith.constant dense<0xFF800000> : vector<8xf32>
    %251 = vector.multi_reduction <maximumf>, %250, %cst_102 [1] : vector<8x8xf32> to vector<8xf32>
    %252 = vector.shape_cast %251 : vector<8xf32> to vector<8x1xf32>
    %253 = vector.broadcast %252 : vector<8x1xf32> to vector<8x8xf32>
    %254 = arith.subf %250, %253 : vector<8x8xf32>
    %255 = math.exp %254 : vector<8x8xf32>
    %cst_103 = arith.constant dense<0.000000e+00> : vector<8xf32>
    %256 = vector.multi_reduction <add>, %255, %cst_103 [1] : vector<8x8xf32> to vector<8xf32>
    %257 = vector.shape_cast %256 : vector<8xf32> to vector<8x1xf32>
    %258 = tpu.reciprocal %257 {approx = true} : vector<8x1xf32> -> vector<8x1xf32>
    %259 = vector.broadcast %258 : vector<8x1xf32> to vector<8x8xf32>
    %260 = arith.mulf %255, %259 : vector<8x8xf32>
    %cst_104 = arith.constant dense<0.000000e+00> : vector<8x8xf32>
    %261 = tpu.matmul %260, %246, %cst_104 {dimension_numbers = #tpu.dot_dimension_numbers<[1], [0], [0], [1], [0, 0, 1, 1], [], []>} : vector<8x8xf32>, vector<8x8xf32>, vector<8x8xf32> -> vector<8x8xf32>
    %262 = tpu.concatenate %207, %225, %243, %261 in 1 : vector<8x8xf32>, vector<8x8xf32>, vector<8x8xf32>, vector<8x8xf32> -> vector<8x32xf32>
    %c1_105 = arith.constant 1 : index
    %c0_106 = arith.constant 0 : index
    %c0_107 = arith.constant 0 : index
    %263 = vector.load %arg5[%c1_105, %c0_106, %c0_107] : memref<2x32x32xf32, #tpu.memory_space<vmem>>, vector<1x32x32xf32>
    %264 = vector.shape_cast %263 : vector<1x32x32xf32> to vector<32x32xf32>
    %cst_108 = arith.constant dense<0.000000e+00> : vector<8x32xf32>
    %265 = tpu.matmul %262, %264, %cst_108 {dimension_numbers = #tpu.dot_dimension_numbers<[1], [0], [0], [1], [0, 0, 1, 1], [], []>} : vector<8x32xf32>, vector<32x32xf32>, vector<8x32xf32> -> vector<8x32xf32>
    %266 = arith.addf %160, %265 : vector<8x32xf32>
    %c1_109 = arith.constant 1 : index
    %c0_110 = arith.constant 0 : index
    %c0_111 = arith.constant 0 : index
    %267 = vector.load %arg6[%c1_109, %c0_110, %c0_111] : memref<2x1x32xf32, #tpu.memory_space<vmem>>, vector<1x1x32xf32>
    %268 = vector.shape_cast %267 : vector<1x1x32xf32> to vector<1x32xf32>
    %269 = vector.broadcast %268 : vector<1x32xf32> to vector<8x32xf32>
    %270 = arith.addf %266, %269 : vector<8x32xf32>
    %c1_112 = arith.constant 1 : index
    %c0_113 = arith.constant 0 : index
    %c0_114 = arith.constant 0 : index
    %271 = vector.load %arg7[%c1_112, %c0_113, %c0_114] : memref<2x1x32xf32, #tpu.memory_space<vmem>>, vector<1x1x32xf32>
    %272 = vector.shape_cast %271 : vector<1x1x32xf32> to vector<1x32xf32>
    %c1_115 = arith.constant 1 : index
    %c0_116 = arith.constant 0 : index
    %c0_117 = arith.constant 0 : index
    %273 = vector.load %arg8[%c1_115, %c0_116, %c0_117] : memref<2x1x32xf32, #tpu.memory_space<vmem>>, vector<1x1x32xf32>
    %274 = vector.shape_cast %273 : vector<1x1x32xf32> to vector<1x32xf32>
    %cst_118 = arith.constant dense<0.000000e+00> : vector<8xf32>
    %275 = vector.multi_reduction <add>, %270, %cst_118 [1] : vector<8x32xf32> to vector<8xf32>
    %276 = vector.shape_cast %275 : vector<8xf32> to vector<8x1xf32>
    %cst_119 = arith.constant 3.200000e+01 : f32
    %277 = vector.broadcast %cst_119 : f32 to vector<8x1xf32>
    %278 = arith.divf %276, %277 : vector<8x1xf32>
    %279 = vector.broadcast %278 : vector<8x1xf32> to vector<8x32xf32>
    %280 = arith.subf %270, %279 : vector<8x32xf32>
    %281 = arith.mulf %280, %280 : vector<8x32xf32>
    %cst_120 = arith.constant dense<0.000000e+00> : vector<8xf32>
    %282 = vector.multi_reduction <add>, %281, %cst_120 [1] : vector<8x32xf32> to vector<8xf32>
    %283 = vector.shape_cast %282 : vector<8xf32> to vector<8x1xf32>
    %cst_121 = arith.constant 3.200000e+01 : f32
    %284 = vector.broadcast %cst_121 : f32 to vector<8x1xf32>
    %285 = arith.divf %283, %284 : vector<8x1xf32>
    %286 = vector.broadcast %278 : vector<8x1xf32> to vector<8x32xf32>
    %287 = arith.subf %270, %286 : vector<8x32xf32>
    %cst_122 = arith.constant 9.99999974E-6 : f32
    %288 = vector.broadcast %cst_122 : f32 to vector<8x1xf32>
    %289 = arith.addf %285, %288 : vector<8x1xf32>
    %290 = math.rsqrt %289 : vector<8x1xf32>
    %291 = vector.broadcast %290 : vector<8x1xf32> to vector<8x32xf32>
    %292 = arith.mulf %287, %291 : vector<8x32xf32>
    %293 = vector.broadcast %272 : vector<1x32xf32> to vector<8x32xf32>
    %294 = arith.mulf %292, %293 : vector<8x32xf32>
    %295 = vector.broadcast %274 : vector<1x32xf32> to vector<8x32xf32>
    %296 = arith.addf %294, %295 : vector<8x32xf32>
    %c1_123 = arith.constant 1 : index
    %c0_124 = arith.constant 0 : index
    %c0_125 = arith.constant 0 : index
    %297 = vector.load %arg9[%c1_123, %c0_124, %c0_125] : memref<2x32x64xf32, #tpu.memory_space<vmem>>, vector<1x32x64xf32>
    %298 = vector.shape_cast %297 : vector<1x32x64xf32> to vector<32x64xf32>
    %cst_126 = arith.constant dense<0.000000e+00> : vector<8x64xf32>
    %299 = tpu.matmul %296, %298, %cst_126 {dimension_numbers = #tpu.dot_dimension_numbers<[1], [0], [0], [1], [0, 0, 1, 1], [], []>} : vector<8x32xf32>, vector<32x64xf32>, vector<8x64xf32> -> vector<8x64xf32>
    %c1_127 = arith.constant 1 : index
    %c0_128 = arith.constant 0 : index
    %c0_129 = arith.constant 0 : index
    %300 = vector.load %arg10[%c1_127, %c0_128, %c0_129] : memref<2x1x64xf32, #tpu.memory_space<vmem>>, vector<1x1x64xf32>
    %301 = vector.shape_cast %300 : vector<1x1x64xf32> to vector<1x64xf32>
    %302 = vector.broadcast %301 : vector<1x64xf32> to vector<8x64xf32>
    %303 = arith.addf %299, %302 : vector<8x64xf32>
    %cst_130 = arith.constant 5.000000e-01 : f32
    %304 = vector.broadcast %cst_130 : f32 to vector<8x64xf32>
    %305 = arith.mulf %304, %303 : vector<8x64xf32>
    %cst_131 = arith.constant 0.707106769 : f32
    %306 = vector.broadcast %cst_131 : f32 to vector<8x64xf32>
    %307 = arith.mulf %303, %306 : vector<8x64xf32>
    %308 = math.erf %307 : vector<8x64xf32>
    %cst_132 = arith.constant 1.000000e+00 : f32
    %309 = vector.broadcast %cst_132 : f32 to vector<8x64xf32>
    %310 = arith.addf %309, %308 : vector<8x64xf32>
    %311 = arith.mulf %305, %310 : vector<8x64xf32>
    %c1_133 = arith.constant 1 : index
    %c0_134 = arith.constant 0 : index
    %c0_135 = arith.constant 0 : index
    %312 = vector.load %arg11[%c1_133, %c0_134, %c0_135] : memref<2x64x32xf32, #tpu.memory_space<vmem>>, vector<1x64x32xf32>
    %313 = vector.shape_cast %312 : vector<1x64x32xf32> to vector<64x32xf32>
    %cst_136 = arith.constant dense<0.000000e+00> : vector<8x32xf32>
    %314 = tpu.matmul %311, %313, %cst_136 {dimension_numbers = #tpu.dot_dimension_numbers<[1], [0], [0], [1], [0, 0, 1, 1], [], []>} : vector<8x64xf32>, vector<64x32xf32>, vector<8x32xf32> -> vector<8x32xf32>
    %315 = arith.addf %270, %314 : vector<8x32xf32>
    %c1_137 = arith.constant 1 : index
    %c0_138 = arith.constant 0 : index
    %c0_139 = arith.constant 0 : index
    %316 = vector.load %arg12[%c1_137, %c0_138, %c0_139] : memref<2x1x32xf32, #tpu.memory_space<vmem>>, vector<1x1x32xf32>
    %317 = vector.shape_cast %316 : vector<1x1x32xf32> to vector<1x32xf32>
    %318 = vector.broadcast %317 : vector<1x32xf32> to vector<8x32xf32>
    %319 = arith.addf %315, %318 : vector<8x32xf32>
    %c0_140 = arith.constant 0 : index
    %c0_141 = arith.constant 0 : index
    %320 = vector.load %arg13[%c0_140, %c0_141] : memref<1x32xf32, #tpu.memory_space<vmem>>, vector<1x32xf32>
    %c0_142 = arith.constant 0 : index
    %c0_143 = arith.constant 0 : index
    %321 = vector.load %arg14[%c0_142, %c0_143] : memref<1x32xf32, #tpu.memory_space<vmem>>, vector<1x32xf32>
    %cst_144 = arith.constant dense<0.000000e+00> : vector<8xf32>
    %322 = vector.multi_reduction <add>, %319, %cst_144 [1] : vector<8x32xf32> to vector<8xf32>
    %323 = vector.shape_cast %322 : vector<8xf32> to vector<8x1xf32>
    %cst_145 = arith.constant 3.200000e+01 : f32
    %324 = vector.broadcast %cst_145 : f32 to vector<8x1xf32>
    %325 = arith.divf %323, %324 : vector<8x1xf32>
    %326 = vector.broadcast %325 : vector<8x1xf32> to vector<8x32xf32>
    %327 = arith.subf %319, %326 : vector<8x32xf32>
    %328 = arith.mulf %327, %327 : vector<8x32xf32>
    %cst_146 = arith.constant dense<0.000000e+00> : vector<8xf32>
    %329 = vector.multi_reduction <add>, %328, %cst_146 [1] : vector<8x32xf32> to vector<8xf32>
    %330 = vector.shape_cast %329 : vector<8xf32> to vector<8x1xf32>
    %cst_147 = arith.constant 3.200000e+01 : f32
    %331 = vector.broadcast %cst_147 : f32 to vector<8x1xf32>
    %332 = arith.divf %330, %331 : vector<8x1xf32>
    %333 = vector.broadcast %325 : vector<8x1xf32> to vector<8x32xf32>
    %334 = arith.subf %319, %333 : vector<8x32xf32>
    %cst_148 = arith.constant 9.99999974E-6 : f32
    %335 = vector.broadcast %cst_148 : f32 to vector<8x1xf32>
    %336 = arith.addf %332, %335 : vector<8x1xf32>
    %337 = math.rsqrt %336 : vector<8x1xf32>
    %338 = vector.broadcast %337 : vector<8x1xf32> to vector<8x32xf32>
    %339 = arith.mulf %334, %338 : vector<8x32xf32>
    %340 = vector.broadcast %320 : vector<1x32xf32> to vector<8x32xf32>
    %341 = arith.mulf %339, %340 : vector<8x32xf32>
    %342 = vector.broadcast %321 : vector<1x32xf32> to vector<8x32xf32>
    %343 = arith.addf %341, %342 : vector<8x32xf32>
    %c0_149 = arith.constant 0 : index
    %c0_150 = arith.constant 0 : index
    %c0_151 = arith.constant 0 : index
    %344 = vector.load %arg15[%c0_149, %c0_150, %c0_151] : memref<1x8x32xf32, #tpu.memory_space<vmem>>, vector<1x8x32xf32>
    %345 = vector.shape_cast %344 : vector<1x8x32xf32> to vector<8x32xf32>
    %346 = vector.shape_cast %343 : vector<8x32xf32> to vector<1x8x32xf32>
    tpu.vector_store %arg15[%c0_149, %c0_150, %c0_151], %346 {strides = array<i32>} : memref<1x8x32xf32, #tpu.memory_space<vmem>>, vector<1x8x32xf32>,
    return
  }
  func.func @transform_0(%arg0: i32) -> (i32, i32, i32) {
    %c0_i32 = arith.constant 0 : i32
    %c0_i32_0 = arith.constant 0 : i32
    %c0_i32_1 = arith.constant 0 : i32
    return %arg0, %c0_i32, %c0_i32_0 : i32, i32, i32
  }
  func.func @transform_1(%arg0: i32) -> (i32, i32, i32) {
    %c0_i32 = arith.constant 0 : i32
    %c0_i32_0 = arith.constant 0 : i32
    %c0_i32_1 = arith.constant 0 : i32
    %c0_i32_2 = arith.constant 0 : i32
    return %c0_i32, %c0_i32_0, %c0_i32_1 : i32, i32, i32
  }
  func.func @transform_2(%arg0: i32) -> (i32, i32, i32) {
    %c0_i32 = arith.constant 0 : i32
    %c0_i32_0 = arith.constant 0 : i32
    %c0_i32_1 = arith.constant 0 : i32
    %c0_i32_2 = arith.constant 0 : i32
    return %c0_i32, %c0_i32_0, %c0_i32_1 : i32, i32, i32
  }
  func.func @transform_3(%arg0: i32) -> (i32, i32, i32) {
    %c0_i32 = arith.constant 0 : i32
    %c0_i32_0 = arith.constant 0 : i32
    %c0_i32_1 = arith.constant 0 : i32
    %c0_i32_2 = arith.constant 0 : i32
    return %c0_i32, %c0_i32_0, %c0_i32_1 : i32, i32, i32
  }
  func.func @transform_4(%arg0: i32) -> (i32, i32, i32) {
    %c0_i32 = arith.constant 0 : i32
    %c0_i32_0 = arith.constant 0 : i32
    %c0_i32_1 = arith.constant 0 : i32
    %c0_i32_2 = arith.constant 0 : i32
    return %c0_i32, %c0_i32_0, %c0_i32_1 : i32, i32, i32
  }
  func.func @transform_5(%arg0: i32) -> (i32, i32, i32) {
    %c0_i32 = arith.constant 0 : i32
    %c0_i32_0 = arith.constant 0 : i32
    %c0_i32_1 = arith.constant 0 : i32
    %c0_i32_2 = arith.constant 0 : i32
    return %c0_i32, %c0_i32_0, %c0_i32_1 : i32, i32, i32
  }
  func.func @transform_6(%arg0: i32) -> (i32, i32, i32) {
    %c0_i32 = arith.constant 0 : i32
    %c0_i32_0 = arith.constant 0 : i32
    %c0_i32_1 = arith.constant 0 : i32
    %c0_i32_2 = arith.constant 0 : i32
    return %c0_i32, %c0_i32_0, %c0_i32_1 : i32, i32, i32
  }
  func.func @transform_7(%arg0: i32) -> (i32, i32, i32) {
    %c0_i32 = arith.constant 0 : i32
    %c0_i32_0 = arith.constant 0 : i32
    %c0_i32_1 = arith.constant 0 : i32
    %c0_i32_2 = arith.constant 0 : i32
    return %c0_i32, %c0_i32_0, %c0_i32_1 : i32, i32, i32
  }
  func.func @transform_8(%arg0: i32) -> (i32, i32, i32) {
    %c0_i32 = arith.constant 0 : i32
    %c0_i32_0 = arith.constant 0 : i32
    %c0_i32_1 = arith.constant 0 : i32
    %c0_i32_2 = arith.constant 0 : i32
    return %c0_i32, %c0_i32_0, %c0_i32_1 : i32, i32, i32
  }
  func.func @transform_9(%arg0: i32) -> (i32, i32, i32) {
    %c0_i32 = arith.constant 0 : i32
    %c0_i32_0 = arith.constant 0 : i32
    %c0_i32_1 = arith.constant 0 : i32
    %c0_i32_2 = arith.constant 0 : i32
    return %c0_i32, %c0_i32_0, %c0_i32_1 : i32, i32, i32
  }
  func.func @transform_10(%arg0: i32) -> (i32, i32, i32) {
    %c0_i32 = arith.constant 0 : i32
    %c0_i32_0 = arith.constant 0 : i32
    %c0_i32_1 = arith.constant 0 : i32
    %c0_i32_2 = arith.constant 0 : i32
    return %c0_i32, %c0_i32_0, %c0_i32_1 : i32, i32, i32
  }
  func.func @transform_11(%arg0: i32) -> (i32, i32, i32) {
    %c0_i32 = arith.constant 0 : i32
    %c0_i32_0 = arith.constant 0 : i32
    %c0_i32_1 = arith.constant 0 : i32
    %c0_i32_2 = arith.constant 0 : i32
    return %c0_i32, %c0_i32_0, %c0_i32_1 : i32, i32, i32
  }
  func.func @transform_12(%arg0: i32) -> (i32, i32) {
    %c0_i32 = arith.constant 0 : i32
    %c0_i32_0 = arith.constant 0 : i32
    %c0_i32_1 = arith.constant 0 : i32
    return %c0_i32, %c0_i32_0 : i32, i32
  }
  func.func @transform_13(%arg0: i32) -> (i32, i32) {
    %c0_i32 = arith.constant 0 : i32
    %c0_i32_0 = arith.constant 0 : i32
    %c0_i32_1 = arith.constant 0 : i32
    return %c0_i32, %c0_i32_0 : i32, i32
  }
  func.func @transform_14(%arg0: i32) -> (i32, i32, i32) {
    %c0_i32 = arith.constant 0 : i32
    %c0_i32_0 = arith.constant 0 : i32
    %c0_i32_1 = arith.constant 0 : i32
    return %arg0, %c0_i32, %c0_i32_0 : i32, i32, i32
  }
}

</mosaic_0001>

<bundles_post_ra>
// kernel: tpu_custom_call.1
= control target key start
LH: loop header
LB: loop body
LE: loop exit
PB: predicated region body
PF: predicated region fallthrough
CT: control target
= control target key end

     0   :  { %s2729_s0 = inlined_call_operand.hbm [shape: f32[2,8,32], index: 0, kind: input, shape index: {}]   ;;  %s2730_s1 = inlined_call_operand.hbm [shape: f32[2,1,32], index: 1, kind: input, shape index: {}]   ;;  %s2731_s2 = inlined_call_operand.hbm [shape: f32[2,1,32], index: 2, kind: input, shape index: {}]   ;;  %s2732_s3 = inlined_call_operand.vmem [shape: f32[2,32,96], index: 3, kind: input, shape index: {}]   ;;  %s2733_s4 = inlined_call_operand.vmem [shape: f32[2,32,32], index: 4, kind: input, shape index: {}]   ;;  %s2734_s5 = inlined_call_operand.vmem [shape: f32[2,1,32], index: 5, kind: input, shape index: {}]   ;;  %s2735_s6 = inlined_call_operand.vmem [shape: f32[2,1,32], index: 6, kind: input, shape index: {}]   ;;  %s2736_s7 = inlined_call_operand.hbm [shape: f32[2,1,32], index: 7, kind: input, shape index: {}]   ;;  %s2737_s8 = inlined_call_operand.vmem [shape: f32[2,32,64], index: 8, kind: input, shape index: {}]   ;;  %s2738_s9 = inlined_call_operand.vmem [shape: f32[2,1,64], index: 9, kind: input, shape index: {}]   ;;  %s2739_s10 = inlined_call_operand.vmem [shape: f32[2,64,32], index: 10, kind: input, shape index: {}]   ;;  %s2740_s11 = inlined_call_operand.vmem [shape: f32[2,1,32], index: 11, kind: input, shape index: {}]   ;;  %s2741_s12 = inlined_call_operand.vmem [shape: f32[1,32], index: 12, kind: input, shape index: {}]   ;;  %s2742_s13 = inlined_call_operand.vmem [shape: f32[1,32], index: 13, kind: input, shape index: {}]   ;;  %s2743_s14 = inlined_call_operand.hbm [shape: f32[2,8,32], index: 14, kind: output, shape index: {}]  }
   0x1   :  { %2758 = sst [smem:[#allocation20_spill]] %s2730_s1 }
   0x2   :  { %2759 = sst [smem:[#allocation21_spill]] %s2731_s2 }
   0x3   :  { %2760 = sst [smem:[#allocation22_spill]] %s2736_s7 }
   0x4   :  { %19 = vsyncpa [#allocation3], 0 }
   0x5   :  { %21 = vsyncpa [#allocation3 + $0x1], 0 }
   0x6   :  { %22 = vsyncpa [#allocation6], 0 }
   0x7   :  { %23 = vsyncpa [#allocation9], 0 }
   0x8   :  { %24 = vsyncpa [#allocation4], 0 }
   0x9   :  { %26 = vsyncpa [#allocation4 + $0x1], 0  ;;  %s2260_s29 = smov 0   ;;  %s2262_s30 = smov 0  }
   0xa   :  { %s2264_s15 = smov 0   ;;  %s2266_s16 = smov 0  }
   0xb LB: > { %2761 = sst [smem:[#allocation15_spill]] %s2151_s29  ;;  %s2284_s20 = sadd.s32 4294967295, %s2163_s16   ;;  %s2163_s16 = sphi %s2266_s16, %s2787_s16   ;;  %s2159_s15 = sphi %s2264_s15, %s2789_s15   ;;  %s2155_s30 = sphi %s2262_s30, %s2791_s30   ;;  %s2151_s29 = sphi %s2260_s29, %s2790_s29  }
   0xc   : > { %2762 = sst [smem:[#allocation16_spill]] %s2159_s15  ;;  %p1736_p0 = scmp.ge.s32.totalorder %s2163_s16, 1 }
   0xd   : > { %s2763_s1 = sld [smem:[#allocation20_spill]]  ;;  %p53_p1 = scmp.eq.s32.totalorder %s2284_s20, 0 }
   0xe   : > { %p362_p2 = scmp.lt.s32.totalorder %s2163_s16, 3  ;;  %s2165_s22 = smov [#allocation5]  }
   0xf   : > { %s375_s23 = sshll.u32 %s2165_s22, 4  ;;  %s2765_s2 = sld [smem:[#allocation21_spill]]  ;;  %s376_s23 = int_to_ptr.vmem [resolvable:$true] %s375_s23 }
  0x10   : > { %p2289_p3 = pnand %p1736_p0, %p362_p2  ;;  %s2767_s7 = sld [smem:[#allocation22_spill]] }
  0x11   : > { %s2166_s22 = smov [#allocation7]   ;;  %s2167_s25 = smov 16  }
  0x12   : > { %p1827_p4 = pneg %p2289_p3  ;;  %s389_s24 = sshll.u32 %s2166_s22, 4  ;;  %s390_s24 = int_to_ptr.vmem [resolvable:$true] %s389_s24 }
  0x13   : > { %s373_s19 = sshll.u32 %s2763_s1, 4  ;;  %s2168_s1 = smov 1   ;;  %s374_s19 = int_to_ptr.hbm [resolvable:$true] %s373_s19 }
  0x14   : > { %p2301_p6 = pnand %p1827_p4, %p53_p1  ;;  %s2169_s28 = smov [#allocation8]  }
  0x15   : > { %s387_s26 = sshll.u32 %s2765_s2, 4  ;;  %s415_s17 = sshll.u32 %s2169_s28, 4  ;;  %s388_s26 = int_to_ptr.hbm [resolvable:$true] %s387_s26  ;;  %s416_s17 = int_to_ptr.vmem [resolvable:$true] %s415_s17 }
  0x16   : > { %s413_s18 = sshll.u32 %s2767_s7, 4  ;;  %s1735_s22 = sadd.s32 4294967294, %s2163_s16   ;;  %s414_s18 = int_to_ptr.hbm [resolvable:$true] %s413_s18 }
  0x17   : > { %1830 = dma.hbm_to_vmem [thread:$0]  (!%p2301_p6), %s374_s19, 32, %s376_s23, [#allocation6], %s2167_s25, %s2167_s25, %s2168_s1  }
  0x18   : > { %1833 = dma.hbm_to_vmem [thread:$0]  (!%p2301_p6), %s388_s26, 32, %s390_s24, [#allocation6], %s2167_s25, %s2167_s25, %s2168_s1  }
  0x19   : > { %1836 = dma.hbm_to_vmem [thread:$0]  (!%p2301_p6), %s414_s18, 32, %s416_s17, [#allocation9], %s2167_s25, %s2167_s25, %s2168_s1  }
  0x1a   : > { %s2316_s2 = sadd.s32 1, %s2163_s16   ;;  %s39_s7 = sadd.s32 1, %s2159_s15 }
  0x1b   : > { %2768 = sst [smem:[#allocation17_spill]] %s2316_s2  ;;  %s36_s19 = ssub.s32 %s2163_s16, %s2316_s2 }
  0x1c   : > { %p46_p7 = scmp.ne.s32.totalorder %s2159_s15, %s2155_s30  ;;  %p37_p8 = scmp.eq.s32.totalorder %s36_s19, 0 }
  0x1d   : > { %p47_p9 = scmp.eq.s32.totalorder %s2163_s16, 0  ;;  %p52_p10 = scmp.ne.s32.totalorder %s2155_s30, %s2151_s29 }
  0x1e   : > { %p349_p11 = scmp.eq.s32.totalorder %s2284_s20, 1  ;;  %p355_p0 = scmp.eq.s32.totalorder %s1735_s22, 1 }
  0x1f   : > { %s2328_s23 = scalar_select %p37_p8, %s2159_s15, %s39_s7  }
  0x20   : > { %p2332_p12 = por %p53_p1, %p52_p10  ;;  %p2336_p13 = por %p349_p11, %p46_p7 }
  0x21   : > { %2769 = sst [smem:[#allocation18_spill]] %s2328_s23  ;;  %p48_p2 = por %p47_p9, %p46_p7 }
  0x22   : > { %s447_s27 = sand.u32 1, %s2159_s15   ;;  %p2341_p4 = por %p355_p0, %p52_p10 }
  0x23   : > { %p1848_p6 = scmp.lt.s32.totalorder %s2163_s16, 2  ;;  %s1741_s24 = sshll.u32 %s447_s27, 3 }
  0x24   : > { %s2772_s18 = scalar_select %p2341_p4, 1, 0 }
  0x25   : > { %s1742_s7 = sshll.u32 %s2163_s16, 3  ;;  %s451_s23 = scalar_lea.vmem [#allocation2], %s1741_s24 }
  0x26   : > { %2773 = sst [smem:[#allocation19_spill]] %s2772_s18  ;;  %s455_s17 = scalar_lea.hbm %s2729_s0, %s1742_s7 }
  0x27   : > { %s457_s19 = sshll.u32 %s455_s17, 4  ;;  %s459_s2 = sshll.u32 %s451_s23, 4  ;;  %s458_s19 = int_to_ptr.hbm [resolvable:$true] %s457_s19  ;;  %s460_s2 = int_to_ptr.vmem [resolvable:$true] %s459_s2 }
  0x28   : > { %p2350_p8 = pnand %p1848_p6, %p48_p2  ;;  %s448_s15 = scalar_lea.sflag [#allocation3], %s447_s27 }
  0x29   : > { %s2059_s29 = sshra.s32 %s458_s19, 4  ;;  %s2066_s23 = scalar_lea.hbm %s2729_s0, 16  ;;  %s2060_s29 = int_to_ptr.hbm [resolvable:$true] %s2059_s29 }
  0x2a   : > { %s2061_s18 = scalar_lea.hbm %s2060_s29, 8  ;;  %p2063_p9 = pneg %p2350_p8 }
  0x2b   : > { %p2062_p7 = scmp.ne.s32.totalorder %s2060_s29, %s2061_s18  ;;  %p2067_p0 = scmp.lt.s32.totalorder %s2060_s29, %s2729_s0 }
  0x2c   : > { %p2068_p2 = scmp.lt.s32.totalorder %s2066_s23, %s2061_s18 }
  0x2d   : > { %p2064_p10 = pnand %p2063_p9, %p2062_p7 }
  0x2e   : > { %p2069_p6 = por %p2068_p2, %p2067_p0 }
  0x2f   : > { %p2065_p11 = pneg %p2064_p10 }
  0x31   : > { %p2070_p5 = pnand %p2069_p6, %p2065_p11 }
  0x33   : > { %2073 = shalt.err (!%p2070_p5)
}
  0x34   : > { %1840 = dma.hbm_to_vmem [thread:$0]  (!%p2350_p8), %s458_s19, 128, %s460_s2, %s448_s15  }
  0x35   : > { %468 = sbr.rel (%p2289_p3) target bundleno = 4880 (0x1310), region = 76  ;;  %s2367_s27 = sand.u32 (!%p2289_p3), 1, %s2155_s30  }
  0x36   : > { %s2749_s17 = sshll.u32 (!%p2289_p3), %s2367_s27, 3  ;;  %s471_s7 = scalar_lea.sflag (!%p2289_p3), [#allocation3], %s2367_s27 }
  0x37   : > { %s474_s29 = scalar_lea.vmem (!%p2289_p3), [#allocation2], %s2749_s17 }
  0x3a   : > { %2134 = dma.done.wait (%p2332_p12), %s471_s7, 128  }
  0x3b   : > { %2136 = vsyncadd (%p2332_p12), %s471_s7, 4294967168 }
  0x3c   : > { %2138 = dma.done.wait (%p53_p1), [#allocation6], 64  }
  0x3d   : > { %2140 = vsyncadd (%p53_p1), [#allocation6], 4294967232 }
  0x3e   : > { %2142 = dma.done.wait (%p53_p1), [#allocation9], 32  }
  0x3f   : > { %2144 = vsyncadd (%p53_p1), [#allocation9], 4294967264  ;;  %vm538_vm0 = vcmask 261120   ;;  %v2385_v0 = vld [vmem:[%s474_s29] sm:$0xff]  ;;  %v2170_v2 = vmov 32.0   ;;  %v579_v14 = vld [vmem:[%s2732_s3 + $0x18] sm:$0xff] }
  0x40   : > { %v539_v1 = vsel %vm538_vm0, %v2385_v0, 0.0  ;;  %1921 = vrcp.f32 %v2170_v2  ;;  %595 = vmatpush.msra.mxu0 %v579_v14  ;;  %v578_v15 = vld [vmem:[%s2732_s3 + $0x10] sm:$0xff]  ;;  %v577_v16 = vld [vmem:[%s2732_s3 + $0x8] sm:$0xff]  ;;  %v576_v17 = vld [vmem:[%s2732_s3] sm:$0xff]  ;;  %s2757_s23 = smov 88   ;;  %s2172_s24 = smov 64  }
  0x41   : > { %540 = vadd.xlane.f32.xlu0 %v539_v1  ;;  %v1905_v27 = vld [vmem:[#allocation5] ss:$0 sm:$0xff]  ;;  %v1906_v30 = vld [vmem:[#allocation7] ss:$0 sm:$0xff]  ;;  %s2173_s28 = smov 96   ;;  %s2174_s7 = smov 80  }
  0x42   : > { %596 = vmatpush.msra.mxu0 %v578_v15  ;;  %s2175_s29 = smov 120   ;;  %s2176_s2 = smov 112   ;;  %vm606_vm5 = vcmask 64512   ;;  %vm880_vm6 = vcmask 130048   ;;  %vm882_vm7 = vcmask 195584   ;;  %vm1032_vm15 = vcmask 523264  }
  0x43   : > { %s2755_s15 = smov 72   ;;  %s2751_s21 = smov 48  }
  0x44   : > { %597 = vmatpush.msra.mxu0 %v577_v16  ;;  %s2754_s26 = smov 104   ;;  %s2752_s18 = smov 40  }
  0x45   : > { %s2753_s19 = smov 56   ;;  %s2750_s22 = smov 16  }
  0x46   : > { %v1922_v3 = vpop.eup %1921  ;;  %598 = vmatpush.msra.mxu0 %v576_v17  ;;  %s2756_s25 = smov 8   ;;  %s2184_s17 = smov 24  }
  0x47   : > { %v543_v4 = vmul.f32 32.0, %v1922_v3  ;;  %vm547_vm1 = vweird.f32 %v1922_v3 }
  0x49   : > { %v544_v5 = vsub.f32 1.0, %v543_v4 }
  0x4b   : > { %v545_v6 = vmul.f32 %v1922_v3, %v544_v5 }
  0x4d   : > { %v546_v7 = vadd.f32 %v1922_v3, %v545_v6 }
  0x4f   : > { %v2389_v8 = vsel %vm547_vm1, %v1922_v3, %v546_v7 }
  0xb4   : > { %v541_v9 = vpop.xlane.xlu0 %540 }
  0xb5   : > { %v549_v10 = vmul.f32 %v2389_v8, %v541_v9 }
  0xb7   : > { %v550_v11 = vsub.f32 %v2385_v0, %v549_v10 }
  0xb9   : > { %v551_v12 = vmul.f32 %v550_v11, %v550_v11 }
  0xbb   : > { %v552_v13 = vsel %vm538_vm0, %v551_v12, 0.0 }
  0xbc   : > { %553 = vadd.xlane.f32.xlu0 %v552_v13 }
 0x12f   : > { %v554_v18 = vpop.xlane.xlu0 %553 }
 0x130   : > { %v555_v19 = vmul.f32 %v554_v18, %v2389_v8 }
 0x132   : > { %v556_v20 = vadd.f32 1e-05, %v555_v19 }
 0x134   : > { %1923 = vrsqrt.f32 %v556_v20  ;;  %vm563_vm3 = vweird.f32 %v556_v20 }
 0x13a   : > { %v1924_v21 = vpop.eup %1923 }
 0x13b   : > { %v558_v22 = vmul.f32 %v1924_v21, %v556_v20  ;;  %vm564_vm2 = vweird.f32 %v1924_v21 }
 0x13c   : > { %vm565_vm4 = vmor %vm563_vm3, %vm564_vm2 }
 0x13d   : > { %v559_v23 = vmul.f32 %v1924_v21, %v558_v22 }
 0x13f   : > { %v560_v24 = vmul.f32 0.5, %v559_v23 }
 0x141   : > { %v561_v25 = vsub.f32 1.5, %v560_v24 }
 0x143   : > { %v562_v26 = vmul.f32 %v1924_v21, %v561_v25 }
 0x145   : > { %v566_v28 = vsel %vm565_vm4, %v1924_v21, %v562_v26 }
 0x146   : > { %v567_v29 = vmul.f32 %v566_v28, %v550_v11 }
 0x148   : > { %v571_v31 = vmul.f32 %v1905_v27, %v567_v29 }
 0x14a   : > { %v575_v32 = vadd.f32 %v1906_v30, %v571_v31  ;;  %v887_v31 = vld [vmem:[%s2733_s4 + $0x18] sm:$0xff] }
 0x14c   : > { %1749 = vmatmul.msk.f32.vlgmr.msra.gmra.mxu0 %vm538_vm0, %v575_v32  ;;  %v886_v32 = vld [vmem:[%s2733_s4 + $0x10] sm:$0xff] }
 0x1c9   : > { %v2408_v33 = vpop.f32.mrf.mxu0 }
 0x1ca   : > { %671 = vrot.lane.b32.xlu0 %v2408_v33, %s2757_s23  ;;  %643 = vrot.lane.b32.xlu2 %v2408_v33, %s2172_s24  ;;  %s2782_s23 = smov 16  }
 0x1cb   : > { %604 = vrot.lane.b32.xlu1 %v2408_v33, %s2173_s28 }
 0x1d2   : > { %737 = vrot.lane.b32.xlu0 %v2408_v33, %s2174_s7  ;;  %669 = vrot.lane.b32.xlu2 %v2408_v33, %s2175_s29 }
 0x1da   : > { %735 = vrot.lane.b32.xlu0 %v2408_v33, %s2176_s2  ;;  %803 = vrot.lane.b32.xlu2 %v2408_v33, %s2755_s15  ;;  %s2780_s15 = smov 48  }
 0x224   : > { %v644_v34 = vpop.permute.xlu2 %643 }
 0x225   : > { %664 = vmatpush.msra.mxu3 %v644_v34  ;;  %v884_v34 = vld [vmem:[%s2733_s4] sm:$0xff] }
 0x22c   : > { %v670_v35 = vpop.permute.xlu2 %669 }
 0x234   : > { %v804_v36 = vpop.permute.xlu2 %803 }
 0x235   : > { %1759 = vmatpush.xpose.msk.msrb.mxu0 %vm606_vm5, %v804_v36 }
 0x23c   : > { %v672_v37 = vpop.permute.xlu0 %671 }
 0x23d   : > { %v605_v38 = vpop.permute.xlu1 %604  ;;  %1753 = vmatpush.xpose.msk.msrb.mxu3 %vm606_vm5, %v672_v37 }
 0x23e   : > { %1750 = vmatpush.xpose.msk.msra.mxu1 %vm606_vm5, %v605_v38 }
 0x241   : > { %1751 = vmatmul.msk.f32.vlgmr.msra.gmra.mxu1 %vm606_vm5, %v2408_v33 }
 0x244   : > { %v738_v39 = vpop.permute.xlu0 %737 }
 0x245   : > { %1756 = vmatpush.xpose.msk.msrb.mxu1 %vm606_vm5, %v738_v39 }
 0x249   : > { %903 = vmatpush.msra.mxu1 %v887_v31  ;;  %v1024_v31 = vld [vmem:[%s2739_s10] sm:$0xff] }
 0x24b   : > { %904 = vmatpush.msra.mxu1 %v886_v32 }
 0x24c   : > { %v736_v40 = vpop.permute.xlu0 %735 }
 0x24d   : > { %1757 = vmatmul.msk.f32.vlgmr.msrb.gmra.mxu1 %vm606_vm5, %v736_v40 }
 0x2be   : > { %v628_v41 = vpop.f32.mrf.mxu1 }
 0x2bf   : > { %v631_v42 = vmul.f32 0.35355338, %v628_v41  ;;  %v1907_v41 = vld [vmem:[%s2734_s5] ss:$0 sm:$0xff] }
 0x2c1   : > { %v632_v43 = vsel %vm606_vm5, %v631_v42, -inf }
 0x2c2   : > { %633 = vmax.xlane.f32.xlu1 %v632_v43 }
 0x2ca   : > { %v760_v44 = vpop.f32.mrf.mxu1 }
 0x2cb   : > { %v763_v45 = vmul.f32 0.35355338, %v760_v44 }
 0x2cd   : > { %v764_v46 = vsel %vm606_vm5, %v763_v45, -inf }
 0x2ce   : > { %765 = vmax.xlane.f32.xlu0 %v764_v46 }
 0x2e2   : > { %775 = vrot.lane.b32.xlu0 %v2408_v33, %s2751_s21  ;;  %s2781_s21 = smov 8  }
 0x335   : > { %v634_v47 = vpop.xlane.xlu1 %633 }
 0x336   : > { %v635_v48 = vsub.f32 %v631_v42, %v634_v47 }
 0x338   : > { %v636_v49 = vmul.f32 1.442695, %v635_v48 }
 0x33a   : > { %1925 = vpow2.f32 %v636_v49 }
 0x340   : > { %v1926_v50 = vpop.eup %1925 }
 0x341   : > { %v638_v51 = vsel %vm606_vm5, %v1926_v50, 0.0  ;;  %v766_v53 = vpop.xlane.xlu0 %765 }
 0x342   : > { %639 = vadd.xlane.f32.xlu2 %v638_v51  ;;  %v767_v62 = vsub.f32 %v763_v45, %v766_v53  ;;  %v952_v51 = vld [vmem:[%s2737_s8 + $0x18] sm:$0xff]  ;;  %v949_v53 = vld [vmem:[%s2737_s8] sm:$0xff] }
 0x344   : > { %v768_v63 = vmul.f32 1.442695, %v767_v62 }
 0x354   : > { %v776_v57 = vpop.permute.xlu0 %775 }
 0x35a   : > { %801 = vrot.lane.b32.xlu2 %v2408_v33, %s2754_s26  ;;  %s2109_s26 = scalar_lea.hbm %s2743_s14, 16 }
 0x3b5   : > { %v640_v52 = vpop.xlane.xlu2 %639 }
 0x3b6   : > { %1927 = vrcp.f32 %v640_v52  ;;  %v950_v52 = vld [vmem:[%s2737_s8 + $0x8] sm:$0xff] }
 0x3b7   : > { %1929 = vpow2.f32 %v768_v63  ;;  %v1908_v63 = vld [vmem:[%s2735_s6] ss:$0 sm:$0xff] }
 0x3bc   : > { %v1928_v54 = vpop.eup %1927 }
 0x3bd   : > { %v802_v55 = vpop.permute.xlu2 %801  ;;  %v642_v56 = vmul.f32 %v1928_v54, %v1926_v50  ;;  %v1930_v4 = vpop.eup %1929 }
 0x3be   : > { %1760 = vmatmul.msk.f32.vlgmr.msrb.gmra.mxu0 %vm606_vm5, %v802_v55  ;;  %v770_v5 = vsel %vm606_vm5, %v1930_v4, 0.0 }
 0x3bf   : > { %1752 = vmatmul.msk.f32.vlgmr.msra.gmra.mxu3 %vm606_vm5, %v642_v56 }
 0x3c0   : > { %796 = vmatpush.msra.mxu3 %v776_v57 }
 0x3c7   : > { %1754 = vmatmul.msk.f32.vlgmr.msrb.gmra.mxu3 %vm606_vm5, %v670_v35 }
 0x3c8   : > { %972 = vmatpush.msrb.mxu3 %v952_v51 }
 0x43b   : > { %v826_v58 = vpop.f32.mrf.mxu0 }
 0x43c   : > { %v829_v59 = vmul.f32 0.35355338, %v826_v58 }
 0x43e   : > { %v830_v60 = vsel %vm606_vm5, %v829_v59, -inf }
 0x43f   : > { %831 = vmax.xlane.f32.xlu2 %v830_v60 }
 0x442   : > { %v2442_v61 = vpop.f32.mrf.mxu3 }
 0x44a   : > { %v694_v1 = vpop.f32.mrf.mxu3 }
 0x44b   : > { %v697_v2 = vmul.f32 0.35355338, %v694_v1 }
 0x44d   : > { %v698_v3 = vsel %vm606_vm5, %v697_v2, -inf }
 0x44e   : > { %699 = vmax.xlane.f32.xlu1 %v698_v3  ;;  %v1909_v3 = vld [vmem:[#allocation8] ss:$0 sm:$0xff] }
 0x456   : > { %771 = vadd.xlane.f32.xlu1 %v770_v5 }
 0x457   : > { %841 = vrot.lane.b32.xlu2 %v2408_v33, %s2752_s18 }
 0x4b2   : > { %v832_v6 = vpop.xlane.xlu2 %831 }
 0x4b3   : > { %v833_v7 = vsub.f32 %v829_v59, %v832_v6  ;;  %v1910_v6 = vld [vmem:[%s2738_s9] ss:$0 sm:$0xff] }
 0x4b5   : > { %v834_v9 = vmul.f32 1.442695, %v833_v7 }
 0x4b7   : > { %1931 = vpow2.f32 %v834_v9 }
 0x4ba   : > { %v842_v26 = vpop.permute.xlu2 %841 }
 0x4bd   : > { %v1932_v10 = vpop.eup %1931 }
 0x4be   : > { %v836_v11 = vsel %vm606_vm5, %v1932_v10, 0.0 }
 0x4bf   : > { %837 = vadd.xlane.f32.xlu1 %v836_v11 }
 0x4c1   : > { %v700_v12 = vpop.xlane.xlu1 %699 }
 0x4c2   : > { %v701_v13 = vsub.f32 %v697_v2, %v700_v12 }
 0x4c4   : > { %v702_v14 = vmul.f32 1.442695, %v701_v13  ;;  %v1031_v13 = vld [vmem:[%s2739_s10 + $0x38] sm:$0xff] }
 0x4c5   : > { %1044 = vmatpush.msra.mxu0 %v1031_v13 }
 0x4c6   : > { %1933 = vpow2.f32 %v702_v14 }
 0x4c9   : > { %v772_v15 = vpop.xlane.xlu1 %771 }
 0x4ca   : > { %1935 = vrcp.f32 %v772_v15 }
 0x4cc   : > { %v1934_v16 = vpop.eup %1933 }
 0x4cd   : > { %v704_v17 = vsel %vm606_vm5, %v1934_v16, 0.0 }
 0x4ce   : > { %705 = vadd.xlane.f32.xlu1 %v704_v17 }
 0x4d0   : > { %v1936_v18 = vpop.eup %1935 }
 0x4d1   : > { %v774_v19 = vmul.f32 %v1936_v18, %v1930_v4 }
 0x4d3   : > { %1758 = vmatmul.msk.f32.vlgmr.msra.gmra.mxu3 %vm606_vm5, %v774_v19  ;;  %v1029_v19 = vld [vmem:[%s2739_s10 + $0x28] sm:$0xff] }
 0x4e7   : > { %709 = vrot.lane.b32.xlu1 %v2408_v33, %s2753_s19  ;;  %v885_v33 = vld [vmem:[%s2733_s4 + $0x8] sm:$0xff] }
 0x4e8   : > { %905 = vmatpush.msra.mxu1 %v885_v33 }
 0x4ea   : > { %906 = vmatpush.msra.mxu1 %v884_v34 }
 0x532   : > { %v838_v20 = vpop.xlane.xlu1 %837 }
 0x541   : > { %v706_v21 = vpop.xlane.xlu1 %705 }
 0x542   : > { %1937 = vrcp.f32 %v706_v21 }
 0x543   : > { %1939 = vrcp.f32 %v838_v20 }
 0x548   : > { %v1938_v22 = vpop.eup %1937 }
 0x549   : > { %v708_v25 = vmul.f32 %v1938_v22, %v1934_v16  ;;  %v1940_v27 = vpop.eup %1939  ;;  %v1030_v16 = vld [vmem:[%s2739_s10 + $0x30] sm:$0xff]  ;;  %v1028_v22 = vld [vmem:[%s2739_s10 + $0x20] sm:$0xff] }
 0x54a   : > { %v840_v28 = vmul.f32 %v1940_v27, %v1932_v10  ;;  %1045 = vmatpush.msra.mxu0 %v1030_v16  ;;  %v1026_v27 = vld [vmem:[%s2739_s10 + $0x10] sm:$0xff] }
 0x54c   : > { %1046 = vmatpush.msra.mxu0 %v1029_v19 }
 0x54e   : > { %1047 = vmatpush.msra.mxu0 %v1028_v22 }
 0x556   : > { %v798_v23 = vpop.f32.mrf.mxu3 }
 0x557   : > { %872 = vrot.lane.b32.xlu0 %v798_v23, %s2750_s22 }
 0x559   : > { %v710_v24 = vpop.permute.xlu1 %709 }
 0x55a   : > { %730 = vmatpush.msra.mxu2 %v710_v24  ;;  %v1027_v24 = vld [vmem:[%s2739_s10 + $0x18] sm:$0xff] }
 0x55b   : > { %1755 = vmatmul.msk.f32.vlgmr.msra.gmra.mxu2 %vm606_vm5, %v708_v25  ;;  %1048 = vmatpush.msra.mxu0 %v1027_v24 }
 0x55c   : > { %862 = vmatpush.msrb.mxu2 %v842_v26 }
 0x55d   : > { %1049 = vmatpush.msra.mxu0 %v1026_v27 }
 0x563   : > { %1761 = vmatmul.msk.f32.vlgmr.msrb.gmra.mxu2 %vm606_vm5, %v840_v28 }
 0x5c9   : > { %v873_v37 = vpop.permute.xlu0 %872 }
 0x5de   : > { %v732_v29 = vpop.f32.mrf.mxu2 }
 0x5df   : > { %868 = vrot.lane.b32.xlu1 %v732_v29, %s2756_s25  ;;  %v1025_v29 = vld [vmem:[%s2739_s10 + $0x8] sm:$0xff] }
 0x5e0   : > { %1050 = vmatpush.msra.mxu0 %v1025_v29 }
 0x5e2   : > { %1051 = vmatpush.msra.mxu0 %v1024_v31 }
 0x5e6   : > { %v864_v30 = vpop.f32.mrf.mxu2 }
 0x5e7   : > { %876 = vrot.lane.b32.xlu1 %v864_v30, %s2184_s17 }
 0x651   : > { %v869_v35 = vpop.permute.xlu1 %868 }
 0x652   : > { %v879_v36 = vsel %vm606_vm5, %v2442_v61, %v869_v35 }
 0x653   : > { %v881_v38 = vsel %vm880_vm6, %v879_v36, %v873_v37 }
 0x659   : > { %v877_v39 = vpop.permute.xlu1 %876 }
 0x65a   : > { %v883_v40 = vsel %vm882_vm7, %v881_v38, %v877_v39 }
 0x65b   : > { %1762 = vmatmul.msk.f32.vlgmr.msra.gmra.mxu1 %vm538_vm0, %v883_v40 }
 0x6d8   : > { %v908_v42 = vpop.f32.mrf.mxu1 }
 0x6d9   : > { %v911_v43 = vadd.f32 %v908_v42, %v2385_v0  ;;  %v951_v0 = vld [vmem:[%s2737_s8 + $0x10] sm:$0xff] }
 0x6da   : > { %973 = vmatpush.msrb.mxu3 %v951_v0 }
 0x6db   : > { %v2479_v44 = vadd.f32 %v1907_v41, %v911_v43 }
 0x6dc   : > { %974 = vmatpush.msrb.mxu3 %v950_v52 }
 0x6dd   : > { %v919_v45 = vsel %vm538_vm0, %v2479_v44, 0.0 }
 0x6de   : > { %920 = vadd.xlane.f32.xlu2 %v919_v45  ;;  %975 = vmatpush.msrb.mxu3 %v949_v53 }
 0x751   : > { %v921_v46 = vpop.xlane.xlu2 %920 }
 0x752   : > { %v922_v47 = vmul.f32 %v921_v46, %v2389_v8 }
 0x754   : > { %v923_v48 = vsub.f32 %v2479_v44, %v922_v47 }
 0x756   : > { %v924_v49 = vmul.f32 %v923_v48, %v923_v48 }
 0x758   : > { %v925_v50 = vsel %vm538_vm0, %v924_v49, 0.0 }
 0x759   : > { %926 = vadd.xlane.f32.xlu0 %v925_v50 }
 0x7cc   : > { %v927_v54 = vpop.xlane.xlu0 %926 }
 0x7cd   : > { %v928_v55 = vmul.f32 %v927_v54, %v2389_v8 }
 0x7cf   : > { %v929_v56 = vadd.f32 1e-05, %v928_v55 }
 0x7d1   : > { %1941 = vrsqrt.f32 %v929_v56  ;;  %vm936_vm9 = vweird.f32 %v929_v56 }
 0x7d7   : > { %v1942_v57 = vpop.eup %1941 }
 0x7d8   : > { %v931_v58 = vmul.f32 %v1942_v57, %v929_v56  ;;  %vm937_vm8 = vweird.f32 %v1942_v57 }
 0x7d9   : > { %vm938_vm10 = vmor %vm936_vm9, %vm937_vm8 }
 0x7da   : > { %v932_v59 = vmul.f32 %v1942_v57, %v931_v58 }
 0x7dc   : > { %v933_v60 = vmul.f32 0.5, %v932_v59 }
 0x7de   : > { %v934_v61 = vsub.f32 1.5, %v933_v60 }
 0x7e0   : > { %v935_v62 = vmul.f32 %v1942_v57, %v934_v61 }
 0x7e2   : > { %v939_v1 = vsel %vm938_vm10, %v1942_v57, %v935_v62  ;;  %v1911_v57 = vld [vmem:[%s2740_s11] ss:$0 sm:$0xff] }
 0x7e3   : > { %v940_v2 = vmul.f32 %v939_v1, %v923_v48 }
 0x7e5   : > { %v944_v4 = vmul.f32 %v1908_v63, %v940_v2 }
 0x7e7   : > { %v948_v5 = vadd.f32 %v1909_v3, %v944_v4  ;;  %v1769_v4 = vld [vmem:[%s2732_s3 + $0x38] sm:$0xff] }
 0x7e8   : > { %1116 = vmatpush.msra.mxu2 %v1769_v4 }
 0x7e9   : > { %1763 = vmatmul.msk.f32.vlgmr.msrb.gmra.mxu3 %vm538_vm0, %v948_v5  ;;  %v1767_v5 = vld [vmem:[%s2732_s3 + $0x28] sm:$0xff] }
 0x86c   : > { %v977_v7 = vpop.f32.mrf.mxu3 }
 0x86d   : > { %v978_v9 = vadd.f32 %v1910_v6, %v977_v7  ;;  %v1766_v6 = vld [vmem:[%s2732_s3 + $0x20] sm:$0xff] }
 0x86f   : > { %v981_v10 = vmul.f32 0.70710677, %v978_v9  ;;  %v980_v54 = vmul.f32 0.5, %v978_v9 }
 0x871   : > { %v982_v11 = vmul.f32 %v981_v10, %v981_v10 }
 0x873   : > { %v983_v12 = vmin.f32 %v982_v11, 16.0 }
 0x875   : > { %v984_v14 = vmul.f32 2.1237322e-06, %v983_v12  ;;  %v995_v15 = vmul.f32 3.8918573e-05, %v983_v12 }
 0x877   : > { %v985_v17 = vadd.f32 0.00028619796, %v984_v14  ;;  %v996_v18 = vadd.f32 0.001143296, %v995_v15 }
 0x879   : > { %v986_v20 = vmul.f32 %v985_v17, %v983_v12  ;;  %v997_v21 = vmul.f32 %v996_v18, %v983_v12  ;;  %v1912_v17 = vld [vmem:[#allocation5 + $0x1] ss:$0 sm:$0xff] }
 0x87b   : > { %v998_v23 = vadd.f32 0.014752088, %v997_v21  ;;  %v987_v25 = vadd.f32 0.0036580483, %v986_v20  ;;  %v1913_v20 = vld [vmem:[#allocation7 + $0x1] ss:$0 sm:$0xff] }
 0x87d   : > { %v999_v26 = vmul.f32 %v998_v23, %v983_v12  ;;  %v988_v30 = vmul.f32 %v987_v25, %v983_v12 }
 0x87f   : > { %v1000_v28 = vadd.f32 0.112945676, %v999_v26  ;;  %v989_v34 = vadd.f32 0.05243302, %v988_v30 }
 0x881   : > { %v1001_v32 = vmul.f32 %v1000_v28, %v983_v12  ;;  %v990_v37 = vmul.f32 %v989_v34, %v983_v12 }
 0x883   : > { %v1002_v33 = vadd.f32 0.4994258, %v1001_v32  ;;  %v991_v38 = vadd.f32 0.18741608, %v990_v37 }
 0x885   : > { %v1003_v35 = vmul.f32 %v1002_v33, %v983_v12  ;;  %v992_v40 = vmul.f32 %v991_v38, %v983_v12 }
 0x887   : > { %v1004_v36 = vadd.f32 1.0, %v1003_v35  ;;  %v993_v45 = vadd.f32 1.1283791, %v992_v40 }
 0x889   : > { %1943 = vrcp.f32 %v1004_v36  ;;  %v1016_v43 = vand.u32 2147483648, %v1004_v36  ;;  %v1014_v47 = vand.u32 2147483647, %v1004_v36  ;;  %vm1010_vm12 = vweird.f32 %v1004_v36 }
 0x88a   : > { %v994_v50 = vmul.f32 %v993_v45, %v981_v10 }
 0x88b   : > { %v1017_v49 = vor.u32 1.1754944e-38, %v1016_v43  ;;  %vm1015_vm14 = vcmp.eq.f32.partialorder %v1014_v47, 8.507059e+37 }
 0x88f   : > { %v1944_v39 = vpop.eup %1943 }
 0x890   : > { %v1006_v41 = vmul.f32 %v1944_v39, %v1004_v36  ;;  %vm1011_vm11 = vweird.f32 %v1944_v39 }
 0x891   : > { %vm1012_vm13 = vmor %vm1010_vm12, %vm1011_vm11 }
 0x892   : > { %v1007_v42 = vsub.f32 1.0, %v1006_v41 }
 0x894   : > { %v1008_v46 = vmul.f32 %v1944_v39, %v1007_v42 }
 0x896   : > { %v1009_v48 = vadd.f32 %v1944_v39, %v1008_v46 }
 0x898   : > { %v1013_v51 = vsel %vm1012_vm13, %v1944_v39, %v1009_v48 }
 0x899   : > { %v1018_v0 = vsel %vm1015_vm14, %v1017_v49, %v1013_v51 }
 0x89a   : > { %v1019_v52 = vmul.f32 %v1018_v0, %v994_v50 }
 0x89c   : > { %v1764_v53 = vclamps-f32 %v1019_v52, 1.0 }
 0x89e   : > { %v1022_v55 = vadd.f32 1.0, %v1764_v53 }
 0x8a0   : > { %v1023_v56 = vmul.f32 %v1022_v55, %v980_v54 }
 0x8a2   : > { %1765 = vmatmul.msk.f32.vlgmr.msra.gmra.mxu0 %vm1032_vm15, %v1023_v56 }
 0x91f   : > { %v1053_v58 = vpop.f32.mrf.mxu0 }
 0x920   : > { %v1056_v59 = vadd.f32 %v1053_v58, %v2479_v44  ;;  %v1768_v44 = vld [vmem:[%s2732_s3 + $0x30] sm:$0xff] }
 0x921   : > { %1117 = vmatpush.msra.mxu2 %v1768_v44 }
 0x922   : > { %v2535_v60 = vadd.f32 %v1911_v57, %v1056_v59 }
 0x923   : > { %1118 = vmatpush.msra.mxu2 %v1767_v5 }
 0x924   : > { %v1066_v61 = vsel %vm538_vm0, %v2535_v60, 0.0 }
 0x925   : > { %1067 = vadd.xlane.f32.xlu1 %v1066_v61  ;;  %1119 = vmatpush.msra.mxu2 %v1766_v6 }
 0x998   : > { %v1068_v62 = vpop.xlane.xlu1 %1067 }
 0x999   : > { %v1069_v63 = vmul.f32 %v1068_v62, %v2389_v8 }
 0x99b   : > { %v1070_v1 = vsub.f32 %v2535_v60, %v1069_v63 }
 0x99d   : > { %v1071_v2 = vmul.f32 %v1070_v1, %v1070_v1 }
 0x99f   : > { %v1072_v3 = vsel %vm538_vm0, %v1071_v2, 0.0 }
 0x9a0   : > { %1073 = vadd.xlane.f32.xlu2 %v1072_v3 }
 0xa13   : > { %v1074_v7 = vpop.xlane.xlu2 %1073 }
 0xa14   : > { %v1075_v9 = vmul.f32 %v1074_v7, %v2389_v8 }
 0xa16   : > { %v1076_v10 = vadd.f32 1e-05, %v1075_v9 }
 0xa18   : > { %1945 = vrsqrt.f32 %v1076_v10  ;;  %vm1083_vm2 = vweird.f32 %v1076_v10 }
 0xa1e   : > { %v1946_v11 = vpop.eup %1945 }
 0xa1f   : > { %v1078_v12 = vmul.f32 %v1946_v11, %v1076_v10  ;;  %vm1084_vm1 = vweird.f32 %v1946_v11 }
 0xa20   : > { %vm1085_vm3 = vmor %vm1083_vm2, %vm1084_vm1 }
 0xa21   : > { %v1079_v13 = vmul.f32 %v1946_v11, %v1078_v12 }
 0xa23   : > { %v1080_v14 = vmul.f32 0.5, %v1079_v13 }
 0xa25   : > { %v1081_v15 = vsub.f32 1.5, %v1080_v14 }
 0xa27   : > { %v1082_v16 = vmul.f32 %v1946_v11, %v1081_v15 }
 0xa29   : > { %v1086_v18 = vsel %vm1085_vm3, %v1946_v11, %v1082_v16 }
 0xa2a   : > { %v1087_v19 = vmul.f32 %v1086_v18, %v1070_v1 }
 0xa2c   : > { %v1091_v21 = vmul.f32 %v1912_v17, %v1087_v19 }
 0xa2e   : > { %v1095_v22 = vadd.f32 %v1913_v20, %v1091_v21  ;;  %v1786_v21 = vld [vmem:[%s2733_s4 + $0x38] sm:$0xff] }
 0xa30   : > { %1770 = vmatmul.msk.f32.vlgmr.msra.gmra.mxu2 %vm538_vm0, %v1095_v22  ;;  %v1785_v22 = vld [vmem:[%s2733_s4 + $0x30] sm:$0xff] }
 0xab3   : > { %v2556_v23 = vpop.f32.mrf.mxu2 }
 0xab4   : > { %1163 = vrot.lane.b32.xlu2 %v2556_v23, %s2172_s24  ;;  %1125 = vrot.lane.b32.xlu0 %v2556_v23, %s2173_s28  ;;  %s2775_s24 = smov 88   ;;  %s2776_s28 = smov 72  }
 0xabc   : > { %1189 = vrot.lane.b32.xlu0 %v2556_v23, %s2175_s29  ;;  %s2778_s29 = smov 56  }
 0xac4   : > { %1257 = vrot.lane.b32.xlu0 %v2556_v23, %s2174_s7  ;;  %s2777_s7 = smov 104  }
 0xacc   : > { %1255 = vrot.lane.b32.xlu0 %v2556_v23, %s2176_s2  ;;  %s2779_s2 = smov 40  }
 0xb0e   : > { %v1164_v24 = vpop.permute.xlu2 %1163 }
 0xb0f   : > { %1184 = vmatpush.msra.mxu3 %v1164_v24  ;;  %v1783_v24 = vld [vmem:[%s2733_s4 + $0x20] sm:$0xff] }
 0xb26   : > { %v1126_v25 = vpop.permute.xlu0 %1125 }
 0xb27   : > { %1771 = vmatpush.xpose.msk.msrb.mxu1 %vm606_vm5, %v1126_v25 }
 0xb2a   : > { %1772 = vmatmul.msk.f32.vlgmr.msrb.gmra.mxu1 %vm606_vm5, %v2556_v23 }
 0xb2e   : > { %v1190_v26 = vpop.permute.xlu0 %1189 }
 0xb36   : > { %v1258_v27 = vpop.permute.xlu0 %1257 }
 0xb37   : > { %1777 = vmatpush.xpose.msk.msrb.mxu3 %vm606_vm5, %v1258_v27 }
 0xb3e   : > { %v1256_v42 = vpop.permute.xlu0 %1255 }
 0xba7   : > { %v1148_v28 = vpop.f32.mrf.mxu1 }
 0xba8   : > { %v1151_v29 = vmul.f32 0.35355338, %v1148_v28 }
 0xbaa   : > { %v1152_v30 = vsel %vm606_vm5, %v1151_v29, -inf }
 0xbab   : > { %1153 = vmax.xlane.f32.xlu1 %v1152_v30 }
 0xbc4   : > { %1191 = vrot.lane.b32.xlu1 %v2556_v23, %s2775_s24 }
 0xbcc   : > { %1323 = vrot.lane.b32.xlu1 %v2556_v23, %s2776_s28 }
 0xc1e   : > { %v1154_v31 = vpop.xlane.xlu1 %1153 }
 0xc1f   : > { %v1155_v32 = vsub.f32 %v1151_v29, %v1154_v31  ;;  %v1914_v31 = vld [vmem:[%s2734_s5 + $0x1] ss:$0 sm:$0xff] }
 0xc21   : > { %v1156_v33 = vmul.f32 1.442695, %v1155_v32 }
 0xc23   : > { %1947 = vpow2.f32 %v1156_v33 }
 0xc29   : > { %v1948_v34 = vpop.eup %1947 }
 0xc2a   : > { %v1158_v35 = vsel %vm606_vm5, %v1948_v34, 0.0 }
 0xc2b   : > { %1159 = vadd.xlane.f32.xlu2 %v1158_v35 }
 0xc36   : > { %v1192_v36 = vpop.permute.xlu1 %1191 }
 0xc37   : > { %1774 = vmatpush.xpose.msk.msrb.mxu2 %vm606_vm5, %v1192_v36 }
 0xc3a   : > { %1775 = vmatmul.msk.f32.vlgmr.msrb.gmra.mxu2 %vm606_vm5, %v1190_v26 }
 0xc3e   : > { %v1324_v37 = vpop.permute.xlu1 %1323 }
 0xc3f   : > { %1780 = vmatpush.xpose.msk.msra.mxu2 %vm606_vm5, %v1324_v37 }
 0xc43   : > { %1321 = vrot.lane.b32.xlu2 %v2556_v23, %s2777_s7 }
 0xc9e   : > { %v1160_v38 = vpop.xlane.xlu2 %1159 }
 0xc9f   : > { %1949 = vrcp.f32 %v1160_v38 }
 0xca5   : > { %v1950_v39 = vpop.eup %1949 }
 0xca6   : > { %v1162_v40 = vmul.f32 %v1950_v39, %v1948_v34  ;;  %v1322_v41 = vpop.permute.xlu2 %1321 }
 0xca7   : > { %1781 = vmatmul.msk.f32.vlgmr.msra.gmra.mxu2 %vm606_vm5, %v1322_v41  ;;  %v1793_v41 = vld [vmem:[%s2737_s8 + $0x38] sm:$0xff] }
 0xca8   : > { %1773 = vmatmul.msk.f32.vlgmr.msra.gmra.mxu3 %vm606_vm5, %v1162_v40 }
 0xca9   : > { %1422 = vmatpush.msra.mxu3 %v1786_v21  ;;  %v1797_v21 = vld [vmem:[%s2739_s10 + $0x40] sm:$0xff] }
 0xcab   : > { %1423 = vmatpush.msra.mxu3 %v1785_v22 }
 0xcb0   : > { %1778 = vmatmul.msk.f32.vlgmr.msrb.gmra.mxu3 %vm606_vm5, %v1256_v42  ;;  %v1791_v42 = vld [vmem:[%s2737_s8 + $0x28] sm:$0xff] }
 0xcbd   : > { %v1214_v43 = vpop.f32.mrf.mxu2 }
 0xcbe   : > { %v1217_v45 = vmul.f32 0.35355338, %v1214_v43  ;;  %v1790_v43 = vld [vmem:[%s2737_s8 + $0x20] sm:$0xff] }
 0xcc0   : > { %v1218_v46 = vsel %vm606_vm5, %v1217_v45, -inf }
 0xcc1   : > { %1219 = vmax.xlane.f32.xlu1 %v1218_v46 }
 0xd2a   : > { %v1346_v47 = vpop.f32.mrf.mxu2 }
 0xd2b   : > { %v1349_v48 = vmul.f32 0.35355338, %v1346_v47  ;;  %v2587_v49 = vpop.f32.mrf.mxu3 }
 0xd2d   : > { %v1350_v50 = vsel %vm606_vm5, %v1349_v48, -inf }
 0xd2e   : > { %1351 = vmax.xlane.f32.xlu2 %v1350_v50 }
 0xd33   : > { %v1280_v51 = vpop.f32.mrf.mxu3 }
 0xd34   : > { %v1283_v0 = vmul.f32 0.35355338, %v1280_v51  ;;  %v1220_v52 = vpop.xlane.xlu1 %1219 }
 0xd35   : > { %v1221_v53 = vsub.f32 %v1217_v45, %v1220_v52 }
 0xd36   : > { %v1284_v54 = vsel %vm606_vm5, %v1283_v0, -inf }
 0xd37   : > { %v1222_v55 = vmul.f32 1.442695, %v1221_v53  ;;  %1285 = vmax.xlane.f32.xlu0 %v1284_v54  ;;  %v1915_v53 = vld [vmem:[%s2735_s6 + $0x1] ss:$0 sm:$0xff] }
 0xd39   : > { %1951 = vpow2.f32 %v1222_v55 }
 0xd3f   : > { %v1952_v56 = vpop.eup %1951 }
 0xd40   : > { %v1224_v57 = vsel %vm606_vm5, %v1952_v56, 0.0 }
 0xd41   : > { %1225 = vadd.xlane.f32.xlu1 %v1224_v57 }
 0xd5a   : > { %1229 = vrot.lane.b32.xlu1 %v2556_v23, %s2778_s29  ;;  %s1621_s29 = scalar_lea.sflag [#allocation4], %s2367_s27 }
 0xda1   : > { %v1352_v58 = vpop.xlane.xlu2 %1351 }
 0xda2   : > { %v1353_v59 = vsub.f32 %v1349_v48, %v1352_v58 }
 0xda4   : > { %v1354_v61 = vmul.f32 1.442695, %v1353_v59  ;;  %v1917_v59 = vld [vmem:[%s2738_s9 + $0x1] ss:$0 sm:$0xff] }
 0xda6   : > { %1953 = vpow2.f32 %v1354_v61 }
 0xdaa   : > { %v1286_v62 = vpop.xlane.xlu0 %1285 }
 0xdab   : > { %v1287_v63 = vsub.f32 %v1283_v0, %v1286_v62 }
 0xdac   : > { %v1954_v1 = vpop.eup %1953 }
 0xdad   : > { %v1288_v2 = vmul.f32 1.442695, %v1287_v63  ;;  %v1356_v3 = vsel %vm606_vm5, %v1954_v1, 0.0 }
 0xdae   : > { %1357 = vadd.xlane.f32.xlu2 %v1356_v3  ;;  %v1804_v3 = vld [vmem:[%s2739_s10 + $0x78] sm:$0xff] }
 0xdaf   : > { %1955 = vpow2.f32 %v1288_v2  ;;  %1568 = vmatpush.msrb.mxu2 %v1804_v3  ;;  %v1919_v3 = vld [vmem:[%s2741_s12] ss:$0 sm:$0xff] }
 0xdb4   : > { %v1226_v5 = vpop.xlane.xlu1 %1225 }
 0xdb5   : > { %v1956_v4 = vpop.eup %1955  ;;  %1957 = vrcp.f32 %v1226_v5  ;;  %v1803_v5 = vld [vmem:[%s2739_s10 + $0x70] sm:$0xff] }
 0xdb6   : > { %v1290_v44 = vsel %vm606_vm5, %v1956_v4, 0.0  ;;  %1569 = vmatpush.msrb.mxu2 %v1803_v5 }
 0xdb7   : > { %1291 = vadd.xlane.f32.xlu0 %v1290_v44 }
 0xdbb   : > { %v1958_v6 = vpop.eup %1957 }
 0xdbc   : > { %v1228_v7 = vmul.f32 %v1958_v6, %v1952_v56  ;;  %v1916_v56 = vld [vmem:[#allocation8 + $0x1] ss:$0 sm:$0xff] }
 0xdc6   : > { %1361 = vrot.lane.b32.xlu2 %v2556_v23, %s2779_s2 }
 0xdcb   : > { %1295 = vrot.lane.b32.xlu0 %v2556_v23, %s2780_s15  ;;  %v1784_v23 = vld [vmem:[%s2733_s4 + $0x28] sm:$0xff] }
 0xdcc   : > { %v1230_v9 = vpop.permute.xlu1 %1229  ;;  %1424 = vmatpush.msra.mxu3 %v1784_v23 }
 0xdcd   : > { %1250 = vmatpush.msra.mxu1 %v1230_v9  ;;  %v1802_v9 = vld [vmem:[%s2739_s10 + $0x68] sm:$0xff] }
 0xdce   : > { %1776 = vmatmul.msk.f32.vlgmr.msra.gmra.mxu1 %vm606_vm5, %v1228_v7  ;;  %1425 = vmatpush.msra.mxu3 %v1783_v24 }
 0xdcf   : > { %1570 = vmatpush.msrb.mxu2 %v1802_v9 }
 0xe21   : > { %v1358_v10 = vpop.xlane.xlu2 %1357 }
 0xe22   : > { %1959 = vrcp.f32 %v1358_v10 }
 0xe28   : > { %v1960_v11 = vpop.eup %1959 }
 0xe29   : > { %v1360_v12 = vmul.f32 %v1960_v11, %v1954_v1  ;;  %v1362_v13 = vpop.permute.xlu2 %1361 }
 0xe2a   : > { %1382 = vmatpush.msrb.mxu1 %v1362_v13  ;;  %v1292_v14 = vpop.xlane.xlu0 %1291 }
 0xe2b   : > { %1782 = vmatmul.msk.f32.vlgmr.msrb.gmra.mxu1 %vm606_vm5, %v1360_v12  ;;  %1961 = vrcp.f32 %v1292_v14  ;;  %v1801_v12 = vld [vmem:[%s2739_s10 + $0x60] sm:$0xff]  ;;  %v1800_v14 = vld [vmem:[%s2739_s10 + $0x58] sm:$0xff] }
 0xe2c   : > { %1571 = vmatpush.msrb.mxu2 %v1801_v12 }
 0xe2e   : > { %1572 = vmatpush.msrb.mxu2 %v1800_v14 }
 0xe31   : > { %v1962_v15 = vpop.eup %1961 }
 0xe32   : > { %v1294_v16 = vmul.f32 %v1962_v15, %v1956_v4 }
 0xe3d   : > { %v1296_v17 = vpop.permute.xlu0 %1295 }
 0xe3e   : > { %1316 = vmatpush.msrb.mxu0 %v1296_v17  ;;  %v1799_v17 = vld [vmem:[%s2739_s10 + $0x50] sm:$0xff] }
 0xe3f   : > { %1779 = vmatmul.msk.f32.vlgmr.msrb.gmra.mxu0 %vm606_vm5, %v1294_v16  ;;  %1573 = vmatpush.msrb.mxu2 %v1799_v17 }
 0xe40   : > { %1496 = vmatpush.msra.mxu0 %v1793_v41 }
 0xe4b   : > { %v1252_v18 = vpop.f32.mrf.mxu1 }
 0xe4c   : > { %1388 = vrot.lane.b32.xlu0 %v1252_v18, %s2781_s21  ;;  %s1808_s21 = sshll.u32 %s2284_s20, 3  ;;  %s2783_s20 = sshll.u32 %s2367_s27, 3 }
 0xe4d   : > { %s1631_s22 = scalar_lea.hbm %s2743_s14, %s1808_s21  ;;  %s534_s28 = scalar_lea.vmem [#allocation10], %s2783_s20 }
 0xe4e   : > { %s1635_s7 = sshll.u32 %s1631_s22, 4  ;;  %s1636_s7 = int_to_ptr.hbm [resolvable:$true] %s1635_s7 }
 0xe4f   : > { %s2103_s2 = sshra.s32 %s1636_s7, 4  ;;  %s2104_s2 = int_to_ptr.hbm [resolvable:$true] %s2103_s2 }
 0xe50   : > { %s2105_s15 = scalar_lea.hbm %s2104_s2, 8  ;;  %p2110_p12 = scmp.lt.s32.totalorder %s2104_s2, %s2743_s14 }
 0xe51   : > { %p2106_p1 = scmp.ne.s32.totalorder %s2104_s2, %s2105_s15  ;;  %p2111_p8 = scmp.lt.s32.totalorder %s2109_s26, %s2105_s15 }
 0xe53   : > { %p2107_p3 = pnand %p2106_p1, %p2336_p13  ;;  %p2112_p7 = por %p2111_p8, %p2110_p12 }
 0xe55   : > { %p2108_p5 = pneg %p2107_p3 }
 0xe57   : > { %p2113_p9 = pnand %p2112_p7, %p2108_p5 }
 0xea8   : > { %v1384_v19 = vpop.f32.mrf.mxu1 }
 0xea9   : > { %1396 = vrot.lane.b32.xlu2 %v1384_v19, %s2184_s17  ;;  %v1798_v19 = vld [vmem:[%s2739_s10 + $0x48] sm:$0xff]  ;;  %s1633_s17 = sshll.u32 %s534_s28, 4  ;;  %s1634_s17 = int_to_ptr.vmem [resolvable:$true] %s1633_s17 }
 0xeaa   : > { %1574 = vmatpush.msrb.mxu2 %v1798_v19 }
 0xeac   : > { %1575 = vmatpush.msrb.mxu2 %v1797_v21 }
 0xebc   : > { %v1318_v20 = vpop.f32.mrf.mxu0 }
 0xebd   : > { %1392 = vrot.lane.b32.xlu1 %v1318_v20, %s2782_s23 }
 0xebe   : > { %v1389_v25 = vpop.permute.xlu0 %1388 }
 0xebf   : > { %v1399_v26 = vsel %vm606_vm5, %v2587_v49, %v1389_v25 }
 0xf03   : > { %v1397_v28 = vpop.permute.xlu2 %1396 }
 0xf2f   : > { %v1393_v27 = vpop.permute.xlu1 %1392 }
 0xf30   : > { %v1400_v29 = vsel %vm880_vm6, %v1399_v26, %v1393_v27 }
 0xf31   : > { %v1401_v30 = vsel %vm882_vm7, %v1400_v29, %v1397_v28 }
 0xf32   : > { %1787 = vmatmul.msk.f32.vlgmr.msra.gmra.mxu3 %vm538_vm0, %v1401_v30 }
 0xfb5   : > { %v1427_v32 = vpop.f32.mrf.mxu3 }
 0xfb6   : > { %v1430_v33 = vadd.f32 %v1427_v32, %v2535_v60  ;;  %v1792_v60 = vld [vmem:[%s2737_s8 + $0x30] sm:$0xff] }
 0xfb7   : > { %1497 = vmatpush.msra.mxu0 %v1792_v60 }
 0xfb8   : > { %v2627_v34 = vadd.f32 %v1914_v31, %v1430_v33 }
 0xfb9   : > { %1498 = vmatpush.msra.mxu0 %v1791_v42 }
 0xfba   : > { %v1441_v35 = vsel %vm538_vm0, %v2627_v34, 0.0 }
 0xfbb   : > { %1442 = vadd.xlane.f32.xlu0 %v1441_v35  ;;  %1499 = vmatpush.msra.mxu0 %v1790_v43 }
0x102e   : > { %v1443_v36 = vpop.xlane.xlu0 %1442 }
0x102f   : > { %v1444_v37 = vmul.f32 %v1443_v36, %v2389_v8 }
0x1031   : > { %v1445_v38 = vsub.f32 %v2627_v34, %v1444_v37 }
0x1033   : > { %v1446_v39 = vmul.f32 %v1445_v38, %v1445_v38 }
0x1035   : > { %v1447_v40 = vsel %vm538_vm0, %v1446_v39, 0.0 }
0x1036   : > { %1448 = vadd.xlane.f32.xlu1 %v1447_v40 }
0x10a9   : > { %v1449_v45 = vpop.xlane.xlu1 %1448 }
0x10aa   : > { %v1450_v46 = vmul.f32 %v1449_v45, %v2389_v8 }
0x10ac   : > { %v1451_v47 = vadd.f32 1e-05, %v1450_v46 }
0x10ae   : > { %1963 = vrsqrt.f32 %v1451_v47  ;;  %vm1458_vm5 = vweird.f32 %v1451_v47 }
0x10b4   : > { %v1964_v48 = vpop.eup %1963 }
0x10b5   : > { %v1453_v49 = vmul.f32 %v1964_v48, %v1451_v47  ;;  %vm1459_vm4 = vweird.f32 %v1964_v48 }
0x10b6   : > { %vm1460_vm6 = vmor %vm1458_vm5, %vm1459_vm4 }
0x10b7   : > { %v1454_v50 = vmul.f32 %v1964_v48, %v1453_v49 }
0x10b9   : > { %v1455_v51 = vmul.f32 0.5, %v1454_v50 }
0x10bb   : > { %v1456_v0 = vsub.f32 1.5, %v1455_v51 }
0x10bd   : > { %v1457_v52 = vmul.f32 %v1964_v48, %v1456_v0 }
0x10bf   : > { %v1461_v54 = vsel %vm1460_vm6, %v1964_v48, %v1457_v52  ;;  %v1918_v48 = vld [vmem:[%s2740_s11 + $0x1] ss:$0 sm:$0xff] }
0x10c0   : > { %v1462_v55 = vmul.f32 %v1461_v54, %v1445_v38 }
0x10c2   : > { %v1466_v57 = vmul.f32 %v1915_v53, %v1462_v55 }
0x10c4   : > { %v1470_v58 = vadd.f32 %v1916_v56, %v1466_v57 }
0x10c6   : > { %1795 = vmatmul.msk.f32.vlgmr.msra.gmra.mxu0 %vm538_vm0, %v1470_v58 }
0x1143   : > { %v1501_v61 = vpop.f32.mrf.mxu0 }
0x1144   : > { %v1502_v62 = vadd.f32 %v1917_v59, %v1501_v61 }
0x1146   : > { %v1505_v63 = vmul.f32 0.70710677, %v1502_v62  ;;  %v1504_v45 = vmul.f32 0.5, %v1502_v62 }
0x1148   : > { %v1506_v1 = vmul.f32 %v1505_v63, %v1505_v63 }
0x114a   : > { %v1507_v2 = vmin.f32 %v1506_v1, 16.0 }
0x114c   : > { %v1508_v4 = vmul.f32 2.1237322e-06, %v1507_v2  ;;  %v1519_v44 = vmul.f32 3.8918573e-05, %v1507_v2 }
0x114e   : > { %v1509_v6 = vadd.f32 0.00028619796, %v1508_v4  ;;  %v1520_v7 = vadd.f32 0.001143296, %v1519_v44  ;;  %v1920_v44 = vld [vmem:[%s2742_s13] ss:$0 sm:$0xff] }
0x1150   : > { %v1510_v10 = vmul.f32 %v1509_v6, %v1507_v2  ;;  %v1521_v11 = vmul.f32 %v1520_v7, %v1507_v2 }
0x1152   : > { %v1522_v13 = vadd.f32 0.014752088, %v1521_v11  ;;  %v1511_v15 = vadd.f32 0.0036580483, %v1510_v10 }
0x1154   : > { %v1523_v16 = vmul.f32 %v1522_v13, %v1507_v2  ;;  %v1512_v20 = vmul.f32 %v1511_v15, %v1507_v2 }
0x1156   : > { %v1524_v18 = vadd.f32 0.112945676, %v1523_v16  ;;  %v1513_v24 = vadd.f32 0.05243302, %v1512_v20 }
0x1158   : > { %v1525_v22 = vmul.f32 %v1524_v18, %v1507_v2  ;;  %v1514_v27 = vmul.f32 %v1513_v24, %v1507_v2 }
0x115a   : > { %v1526_v23 = vadd.f32 0.4994258, %v1525_v22  ;;  %v1515_v28 = vadd.f32 0.18741608, %v1514_v27 }
0x115c   : > { %v1527_v25 = vmul.f32 %v1526_v23, %v1507_v2  ;;  %v1516_v30 = vmul.f32 %v1515_v28, %v1507_v2 }
0x115e   : > { %v1528_v26 = vadd.f32 1.0, %v1527_v25  ;;  %v1517_v35 = vadd.f32 1.1283791, %v1516_v30 }
0x1160   : > { %1965 = vrcp.f32 %v1528_v26  ;;  %v1540_v33 = vand.u32 2147483648, %v1528_v26  ;;  %v1538_v37 = vand.u32 2147483647, %v1528_v26  ;;  %vm1534_vm8 = vweird.f32 %v1528_v26 }
0x1161   : > { %v1518_v40 = vmul.f32 %v1517_v35, %v1505_v63 }
0x1162   : > { %v1541_v39 = vor.u32 1.1754944e-38, %v1540_v33  ;;  %vm1539_vm10 = vcmp.eq.f32.partialorder %v1538_v37, 8.507059e+37 }
0x1166   : > { %v1966_v29 = vpop.eup %1965 }
0x1167   : > { %v1530_v31 = vmul.f32 %v1966_v29, %v1528_v26  ;;  %vm1535_vm7 = vweird.f32 %v1966_v29 }
0x1168   : > { %vm1536_vm9 = vmor %vm1534_vm8, %vm1535_vm7 }
0x1169   : > { %v1531_v32 = vsub.f32 1.0, %v1530_v31 }
0x116b   : > { %v1532_v36 = vmul.f32 %v1966_v29, %v1531_v32 }
0x116d   : > { %v1533_v38 = vadd.f32 %v1966_v29, %v1532_v36 }
0x116f   : > { %v1537_v41 = vsel %vm1536_vm9, %v1966_v29, %v1533_v38 }
0x1170   : > { %v1542_v60 = vsel %vm1539_vm10, %v1541_v39, %v1537_v41 }
0x1171   : > { %v1543_v42 = vmul.f32 %v1542_v60, %v1518_v40 }
0x1173   : > { %v1796_v43 = vclamps-f32 %v1543_v42, 1.0 }
0x1175   : > { %v1546_v46 = vadd.f32 1.0, %v1796_v43 }
0x1177   : > { %v1547_v47 = vmul.f32 %v1546_v46, %v1504_v45 }
0x1179   : > { %1805 = vmatmul.msk.f32.vlgmr.msrb.gmra.mxu2 %vm1032_vm15, %v1547_v47 }
0x11fc   : > { %v1577_v49 = vpop.f32.mrf.mxu2 }
0x11fd   : > { %v1580_v50 = vadd.f32 %v1577_v49, %v2627_v34 }
0x11ff   : > { %v1586_v51 = vadd.f32 %v1918_v48, %v1580_v50 }
0x1201   : > { %v1589_v0 = vsel %vm538_vm0, %v1586_v51, 0.0 }
0x1202   : > { %1590 = vadd.xlane.f32.xlu2 %v1589_v0 }
0x1275   : > { %v1591_v52 = vpop.xlane.xlu2 %1590 }
0x1276   : > { %v1592_v53 = vmul.f32 %v1591_v52, %v2389_v8 }
0x1278   : > { %v1593_v54 = vsub.f32 %v1586_v51, %v1592_v53 }
0x127a   : > { %v1594_v55 = vmul.f32 %v1593_v54, %v1593_v54 }
0x127c   : > { %v1595_v56 = vsel %vm538_vm0, %v1594_v55, 0.0 }
0x127d   : > { %1596 = vadd.xlane.f32.xlu0 %v1595_v56 }
0x12f0   : > { %v1597_v57 = vpop.xlane.xlu0 %1596 }
0x12f1   : > { %v1598_v58 = vmul.f32 %v1597_v57, %v2389_v8 }
0x12f3   : > { %v1599_v59 = vadd.f32 1e-05, %v1598_v58 }
0x12f5   : > { %1967 = vrsqrt.f32 %v1599_v59  ;;  %vm1606_vm12 = vweird.f32 %v1599_v59 }
0x12fb   : > { %v1968_v34 = vpop.eup %1967 }
0x12fc   : > { %v1601_v61 = vmul.f32 %v1968_v34, %v1599_v59  ;;  %vm1607_vm11 = vweird.f32 %v1968_v34 }
0x12fd   : > { %vm1608_vm13 = vmor %vm1606_vm12, %vm1607_vm11 }
0x12fe   : > { %v1602_v62 = vmul.f32 %v1968_v34, %v1601_v61 }
0x1300   : > { %v1603_v63 = vmul.f32 0.5, %v1602_v62 }
0x1302   : > { %v1604_v1 = vsub.f32 1.5, %v1603_v63 }
0x1304   : > { %v1605_v2 = vmul.f32 %v1968_v34, %v1604_v1 }
0x1306   : > { %v1609_v8 = vsel %vm1608_vm13, %v1968_v34, %v1605_v2 }
0x1307   : > { %v1610_v4 = vmul.f32 %v1609_v8, %v1593_v54 }
0x1309   : > { %v1614_v5 = vmul.f32 %v1919_v3, %v1610_v4 }
0x130b   : > { %v1618_v6 = vadd.f32 %v1920_v44, %v1614_v5 }
0x130d   : > { %1619 = vst.msk [vmem:[%s534_s28] sm:$0xff] %vm538_vm0, %v1618_v6 }
0x130e   : > { %2116 = shalt.err (!%p2113_p9)
}
0x130f   : > { %1825 = dma.vmem_to_hbm [thread:$0]  (%p2336_p13), %s1634_s17, 128, %s1636_s7, %s1621_s29  }
0x1310 PF: > { %s2784_s27 = sld [smem:[#allocation15_spill]]  ;;  %p2786_p10 = scmp.ge.s32.totalorder %s2163_s16, 2 }
0x1312   : > { %p1842_p11 = pnand %p2786_p10, %p2341_p4 }
0x1314   : > { %p1843_p0 = pneg %p1842_p11 }
0x1316   : > { %s1647_s25 = sand.u32 1, %s2784_s27  }
0x1317   : > { %s1648_s24 = scalar_lea.sflag [#allocation4], %s1647_s25 }
0x1318   : > { %2146 = dma.done.wait (%p1843_p0), %s1648_s24, 128  }
0x1319   : > { %2148 = vsyncadd (%p1843_p0), %s1648_s24, 4294967168  ;;  %s2787_s16 = sld [smem:[#allocation17_spill]]  ;;  %s2790_s29 = smov %s2155_s30 }
0x131a   : > { %s2788_s20 = sld [smem:[#allocation16_spill]] }
0x131b   : > { %s2789_s15 = sld [smem:[#allocation18_spill]] }
0x131f   : > { %p29_p2 = scmp.ge.s32.totalorder %s2787_s16, 4  }
0x1320   : > { %s2791_s30 = smov %s2788_s20 }
0x1321   :  { %31 = sbr.rel (!%p29_p2) target bundleno = 11 (0xb), region = 144 }
0x1326   :  { %1654 = vsyncpa [#allocation3], 1 }
0x1327   :  { %1656 = vsyncpa [#allocation3 + $0x1], 1 }
0x1328   :  { %1657 = vsyncpa [#allocation6], 1 }
0x1329   :  { %1658 = vsyncpa [#allocation9], 1 }
0x132a   :  { %1659 = vsyncpa [#allocation4], 1 }
0x132b   :  { %1661 = vsyncpa [#allocation4 + $0x1], 1 }

</bundles_post_ra>
